<compile_context>
chip_gen: v7x
topology: tpu7x:2x2x1
jax: 0.10.0
libtpu: 0.0.40
codegen_flags: <defaults>
</compile_context>

<pallas_src>
import math
import functools

import numpy as np
import jax
import jax.numpy as jnp
from jax import lax
from jax.experimental import pallas as pl
from jax.experimental.pallas import tpu as pltpu


def _cdiv(a, b):
    return (a + b - 1) // b


def _round_up(a, b):
    return _cdiv(a, b) * b


_NT = (((1,), (1,)), ((), ()))  # contract last dims of both operands ("A @ B.T")


# ----------------------------------------------------------------------------
# Fused per-layer kernel:
#   GLU message passing (edge-chunk reduction over a scalar-prefetched schedule)
#   + (1+eps)*h residual + per-graph attention + energy encoder + spec_encoder GLU.
# ----------------------------------------------------------------------------

def _rr_layer_kernel(sched_ref, cnt_ref, ncnt_ref,                    # scalar prefetch (SMEM)
                     esb_ref, elen_ref, src_ref, dst_ref,             # edge-chunk streams
                     nh_ref, specx_ref, nodewT_ref, edgewT_ref,       # node / layer weights
                     we_ref, specacc_ref, wspec_ref, bspec_ref,
                     eps_ref, exp_ref, be_ref,                        # SMEM scalars
                     newh_ref, specacc_out_ref, specout_ref,          # outputs
                     agg_ref, nprojT_ref,                             # VMEM scratch
                     *, nb, h, opad, scale):
    n = pl.program_id(0)          # node tile == graph index
    c = pl.program_id(1)          # edge-chunk reduction step
    te = esb_ref.shape[0]

    @pl.when(c == 0)
    def _init():
        agg_ref[...] = jnp.zeros_like(agg_ref)
        # per-tile node GLU projections, transposed: rows = [val_src|gate_src|val_dst|gate_dst]
        nprojT_ref[...] = lax.dot_general(
            nodewT_ref[...], nh_ref[...].astype(jnp.bfloat16), _NT,
            preferred_element_type=jnp.float32)                           # [4H, NB]

    @pl.when(c < cnt_ref[n])
    def _accumulate():
        # edge-feature GLU projection (bias rides the appended ones column)   [2H, TE]
        eterm = lax.dot_general(edgewT_ref[...], esb_ref[...], _NT,
                                preferred_element_type=jnp.float32)
        # block-local one-hot selectors (rows = node slots of this graph tile)
        rows = n * nb + lax.broadcasted_iota(jnp.int32, (nb, te), 0)       # [NB, TE]
        src_oh = (src_ref[...] == rows).astype(jnp.bfloat16)               # [NB, TE]
        dst_oh = (dst_ref[...] == rows).astype(jnp.bfloat16)               # [NB, TE]
        nprojTb = nprojT_ref[...].astype(jnp.bfloat16)                     # [4H, NB]
        pre = (eterm
               + jnp.dot(nprojTb[:2 * h, :], src_oh,
                         preferred_element_type=jnp.float32)
               + jnp.dot(nprojTb[2 * h:, :], dst_oh,
                         preferred_element_type=jnp.float32))              # [2H, TE]
        msg = pre[:h, :] * jax.nn.sigmoid(pre[h:, :])                      # [H, TE]
        # edge weight r ** exp (reference: exp(log(r) * exp)), applied in f32
        esc = jnp.exp(jnp.log(elen_ref[...]) * exp_ref[0])                 # [1, TE]
        msg = msg * esc
        # scatter-sum onto this tile's rows via the dst one-hot (bf16 MXU, f32 acc)
        agg_ref[...] += lax.dot_general(dst_oh, msg.astype(jnp.bfloat16), _NT,
                                        preferred_element_type=jnp.float32)  # [NB, H]

    @pl.when(c == pl.num_programs(1) - 1)
    def _finalize():
        # TODO(synk): zero in-degree nodes get agg = 0 here, while DGL's UDF reducer
        # would keep their previous mailbox; not hit by connected crystal graphs.
        h_new = (1.0 + eps_ref[0]) * nh_ref[...] + agg_ref[...]            # [NB, H]
        newh_ref[...] = h_new

        # ---- per-graph attention (keys on sublanes, H queries on lanes) ----
        hb = h_new.astype(jnp.bfloat16)
        s = lax.dot_general(hb, specx_ref[0], _NT,
                            preferred_element_type=jnp.float32) * scale    # [NB, H]
        krow = lax.broadcasted_iota(jnp.int32, (nb, h), 0)
        s = jnp.where(krow < ncnt_ref[n], s, -1e30)                        # mask padded nodes
        s = s - jnp.max(s, axis=0, keepdims=True)
        p = jnp.exp(s)
        p = p / jnp.sum(p, axis=0, keepdims=True)                          # exact softmax

        # energy encoder folded through the attention: e[q] = sum_k p[k,q] * (h[k].w)
        hw = jnp.sum(h_new * we_ref[...], axis=1, keepdims=True)           # [NB, 1]
        e_row = jnp.sum(p * hw, axis=0, keepdims=True)                     # [1, H]
        # NOTE: the encoder bias is added per layer on purpose (the reference sums
        # per-layer encoder outputs, so the bias appears num_layers times).
        spec_total = specacc_ref[0] + e_row + be_ref[0]                    # [1, H]
        specacc_out_ref[0] = spec_total

        # ---- fused spec_encoder GLU (only the last layer's result is consumed) ----
        sg = jnp.dot(spec_total, wspec_ref[...],
                     preferred_element_type=jnp.float32) + bspec_ref[...]  # [1, 2*opad]
        specout_ref[0] = sg[:, :opad] * jax.nn.sigmoid(sg[:, opad:])


def _rr_layer(sched, cnt, counts, esb, elen_row, src_row, dst_row,
              node_h, spec_xb, node_wT, edge_wT, we_row, spec_acc,
              wspec, bspec, eps, expv, be, *, nb, te, h, opad):
    B = counts.shape[0]
    n_pad = node_h.shape[0]
    max_chunks = sched.shape[1]
    d_aug = esb.shape[1]
    scale = 1.0 / math.sqrt(h)

    edge2d = lambda n, c, s, k, m: (s[n, c], 0)
    edge1d = lambda n, c, s, k, m: (0, s[n, c])
    nodemap = lambda n, c, s, k, m: (n, 0)
    graph3 = lambda n, c, s, k, m: (n, 0, 0)
    fix2 = lambda n, c, s, k, m: (0, 0)

    grid_spec = pltpu.PrefetchScalarGridSpec(
        num_scalar_prefetch=3,
        grid=(B, max_chunks),
        in_specs=[
            pl.BlockSpec((te, d_aug), edge2d),                   # edge SBHF (+ones col), bf16
            pl.BlockSpec((1, te), edge1d),                       # edge length, f32
            pl.BlockSpec((1, te), edge1d),                       # src node ids, i32
            pl.BlockSpec((1, te), edge1d),                       # dst node ids, i32
            pl.BlockSpec((nb, h), nodemap),                      # node features (aliased -> out 0)
            pl.BlockSpec((1, h, h), graph3),                     # spec_x, bf16
            pl.BlockSpec((4 * h, h), fix2),                      # node GLU weights^T, bf16
            pl.BlockSpec((2 * h, d_aug), fix2),                  # edge GLU weights^T (+bias col), bf16
            pl.BlockSpec((1, h), fix2),                          # energy encoder weight row, f32
            pl.BlockSpec((1, 1, h), graph3),                     # spectrum accumulator (aliased -> out 1)
            pl.BlockSpec((h, 2 * opad), fix2),                   # spec_encoder GLU weights (val||gate)
            pl.BlockSpec((1, 2 * opad), fix2),                   # spec_encoder GLU bias
            pl.BlockSpec(memory_space=pltpu.MemorySpace.SMEM),   # eps (1,)
            pl.BlockSpec(memory_space=pltpu.MemorySpace.SMEM),   # exp (1,)
            pl.BlockSpec(memory_space=pltpu.MemorySpace.SMEM),   # energy encoder bias (1,)
        ],
        out_specs=[
            pl.BlockSpec((nb, h), nodemap),                      # new node features
            pl.BlockSpec((1, 1, h), graph3),                     # updated spectrum accumulator
            pl.BlockSpec((1, 1, opad), graph3),                  # fused spec_encoder output
        ],
        scratch_shapes=[pltpu.VMEM((nb, h), jnp.float32),        # aggregation accumulator
                        pltpu.VMEM((4 * h, nb), jnp.float32)],   # per-tile node projections^T
    )
    return pl.pallas_call(
        functools.partial(_rr_layer_kernel, nb=nb, h=h, opad=opad, scale=scale),
        grid_spec=grid_spec,
        out_shape=(jax.ShapeDtypeStruct((n_pad, h), jnp.float32),
                   jax.ShapeDtypeStruct((B, 1, h), jnp.float32),
                   jax.ShapeDtypeStruct((B, 1, opad), jnp.float32)),
        input_output_aliases={7: 0, 12: 1},
        compiler_params=pltpu.CompilerParams(
            dimension_semantics=("parallel", "arbitrary"),
            vmem_limit_bytes=48 * 1024 * 1024),
    )(sched, cnt, counts, esb, elen_row, src_row, dst_row,
      node_h, spec_xb, node_wT, edge_wT, we_row, spec_acc,
      wspec, bspec, eps, expv, be)


# ----------------------------------------------------------------------------
# Jitted numeric forward (all shapes static; one pallas_call per GNN layer)
# ----------------------------------------------------------------------------

def _forward_core(drv, atomic_num, spec_atom_index, new_idx,
                  esb, elen_row, src_row, dst_row, sched, cnt, counts,
                  *, H, B, NB, n_pad, TE, opad, xas_len):
    # initial node features (atom embedding) scattered into the padded per-graph layout
    emb = jnp.take(drv["atom_emb"], atomic_num, axis=0)
    node_h = jnp.zeros((n_pad, H), jnp.float32).at[new_idx].set(emb)

    # spec_transform: MLP on the absorbing-atom embedding, [B, H, 1] -> [B, H, H].
    # TODO(synk): MLPBlock internals (activation / norm) are not given; a bias-free
    # ReLU MLP is assumed.  K=1 first layer, so it runs as plain XLA (no tiny kernel).
    spec_emb = jnp.take(drv["atom_emb"], spec_atom_index, axis=0)
    x = spec_emb.reshape(B * H, 1)
    h1 = jnp.maximum(jnp.dot(x, drv["mlp_w1"]), 0.0)
    h2 = jnp.maximum(jnp.dot(h1, drv["mlp_w2"]), 0.0)
    spec_xb = jnp.dot(h2, drv["mlp_w3"]).reshape(B, H, H).astype(jnp.bfloat16)

    spec_acc = jnp.zeros((B, 1, H), jnp.float32)
    spec_out = jnp.zeros((B, 1, opad), jnp.float32)
    for lyr in drv["layers"]:
        node_h, spec_acc, spec_out = _rr_layer(
            sched, cnt, counts, esb, elen_row, src_row, dst_row,
            node_h, spec_xb, lyr["node_wT"], lyr["edge_wT"],
            drv["we_row"], spec_acc, drv["wspec"], drv["bspec"],
            lyr["eps"], lyr["expv"], drv["be"],
            nb=NB, te=TE, h=H, opad=opad)
    return spec_out[:, 0, :xas_len]


# ----------------------------------------------------------------------------
# Host-side graph preprocessing (numpy, static shapes) and derived weights
# ----------------------------------------------------------------------------

def _prepare_graph(src, dst, node_graph_id, num_graphs, edge_len, edge_sbhf):
    src_np = np.asarray(src).astype(np.int64)
    dst_np = np.asarray(dst).astype(np.int64)
    gid_np = np.asarray(node_graph_id).astype(np.int64)
    B = int(num_graphs)
    N = gid_np.shape[0]
    E = src_np.shape[0]
    D = int(np.asarray(edge_sbhf).shape[1])

    counts = np.bincount(gid_np, minlength=B).astype(np.int32)
    NB = int(_round_up(max(int(counts.max()), 1), 8))
    n_pad = B * NB
    graph_start = np.concatenate([[0], np.cumsum(counts)[:-1]]).astype(np.int64)
    new_idx = (gid_np * NB + (np.arange(N) - graph_start[gid_np])).astype(np.int32)

    # TODO(synk): assumes DGL-batched graphs (no cross-graph edges), so both endpoints
    # of every edge fall inside its destination graph's node tile.
    src_p = new_idx[src_np]
    dst_p = new_idx[dst_np]
    order = np.argsort(dst_p, kind="stable")
    src_s = src_p[order]
    dst_s = dst_p[order]

    TE = int(min(2048, _round_up(max(E, 1), 256)))
    e_pad = (int(np.ceil(E / TE)) + 1) * TE          # guarantees one all-padding chunk
    num_chunks = e_pad // TE
    pad_e = e_pad - E

    src_full = np.concatenate([src_s, np.full(pad_e, -1, np.int32)]).astype(np.int32)
    dst_full = np.concatenate([dst_s, np.full(pad_e, -1, np.int32)]).astype(np.int32)

    # per-graph chunk schedule (scalar-prefetched)
    bounds = np.searchsorted(dst_s, np.arange(B + 1) * NB).astype(np.int64)
    lo, hi = bounds[:-1], bounds[1:]
    chunk_lo = lo // TE
    cnt = np.where(hi > lo, (hi - 1) // TE + 1 - chunk_lo, 0).astype(np.int32)
    max_chunks = int(max(int(cnt.max()), 1))
    c_iota = np.arange(max_chunks)
    sched = np.where(c_iota[None, :] < cnt[:, None],
                     chunk_lo[:, None] + c_iota[None, :],
                     num_chunks - 1).astype(np.int32)

    # device-side edge data, reordered / padded once and reused by every layer
    elen = jnp.asarray(edge_len, jnp.float32)[order]
    esb = jnp.asarray(edge_sbhf, jnp.float32)[order]
    elen_row = jnp.concatenate(
        [elen, jnp.ones((pad_e,), jnp.float32)]).reshape(1, e_pad)
    esb_pad = jnp.concatenate([esb, jnp.zeros((pad_e, D), jnp.float32)], axis=0)
    esb_aug = jnp.concatenate(
        [esb_pad, jnp.ones((e_pad, 1), jnp.float32)], axis=1).astype(jnp.bfloat16)

    meta = dict(B=B, NB=NB, n_pad=n_pad, TE=TE, max_chunks=max_chunks)
    arrays = dict(
        new_idx=jnp.asarray(new_idx),
        counts=jnp.asarray(counts),
        sched=jnp.asarray(sched),
        cnt=jnp.asarray(cnt),
        src_row=jnp.asarray(src_full).reshape(1, e_pad),
        dst_row=jnp.asarray(dst_full).reshape(1, e_pad),
        elen_row=elen_row,
        esb=esb_aug,
    )
    return meta, arrays


def _derive_weights(params, opad):
    H = params["H"]
    xas_len = params["spec_wv"].shape[1]
    D = params["gnn"][0]["glu_wv"].shape[0] - 2 * H
    drv = dict(
        atom_emb=params["atom_emb"].astype(jnp.float32),
        mlp_w1=params["mlp_w1"].astype(jnp.float32),
        mlp_w2=params["mlp_w2"].astype(jnp.float32),
        mlp_w3=params["mlp_w3"].astype(jnp.float32),
        we_row=params["enc_w"].reshape(1, H).astype(jnp.float32),
        be=params["enc_b"].reshape(1).astype(jnp.float32),
    )
    pad_o = opad - xas_len
    wv = jnp.pad(params["spec_wv"], ((0, 0), (0, pad_o)))
    wg = jnp.pad(params["spec_wg"], ((0, 0), (0, pad_o)))
    bv = jnp.pad(params["spec_bv"], ((0, 0), (0, pad_o)))
    bg = jnp.pad(params["spec_bg"], ((0, 0), (0, pad_o)))
    drv["wspec"] = jnp.concatenate([wv, wg], axis=1).astype(jnp.float32)   # [H, 2*opad]
    drv["bspec"] = jnp.concatenate([bv, bg], axis=1).astype(jnp.float32)   # [1, 2*opad]

    layers = []
    for lyr in params["gnn"]:
        # TODO(synk): GatedLinearUnit internals assumed to be Linear_v(x)*sigmoid(Linear_g(x)).
        wv_, wg_ = lyr["glu_wv"], lyr["glu_wg"]                            # [2H+D, H]
        node_wT = jnp.concatenate(
            [wv_[:H], wg_[:H], wv_[H + D:], wg_[H + D:]],
            axis=1).T.astype(jnp.bfloat16)                                 # [4H, H]
        edge_block = jnp.concatenate([wv_[H:H + D], wg_[H:H + D]], axis=1)  # [D, 2H]
        bias_col = jnp.concatenate([lyr["glu_bv"], lyr["glu_bg"]], axis=1).T  # [2H, 1]
        edge_wT = jnp.concatenate(
            [edge_block.T, bias_col], axis=1).astype(jnp.bfloat16)         # [2H, D+1]
        layers.append(dict(
            node_wT=node_wT, edge_wT=edge_wT,
            eps=lyr["eps"].reshape(1).astype(jnp.float32),
            expv=lyr["exp"].reshape(1).astype(jnp.float32)))
    drv["layers"] = layers
    return drv


def xas_forward(params, atomic_num, spec_atom_index, src, dst,
                edge_len, edge_sbhf, node_graph_id, num_graphs):
    H = params["H"]
    xas_len = params["spec_wv"].shape[1]
    opad = _round_up(xas_len, 128)

    meta, g = _prepare_graph(src, dst, node_graph_id, num_graphs, edge_len, edge_sbhf)
    drv = _derive_weights(params, opad)

    core = jax.jit(functools.partial(
        _forward_core, H=H, B=meta["B"], NB=meta["NB"], n_pad=meta["n_pad"],
        TE=meta["TE"], opad=opad, xas_len=xas_len))
    return core(drv,
                jnp.asarray(atomic_num, jnp.int32),
                jnp.asarray(spec_atom_index, jnp.int32),
                g["new_idx"], g["esb"], g["elen_row"], g["src_row"], g["dst_row"],
                g["sched"], g["cnt"], g["counts"])


# ----------------------------------------------------------------------------
# Deterministic parameter / input construction
# ----------------------------------------------------------------------------

def make_params(key, H, edge_dim, xas_len, gnn_layers):
    ks = iter(jax.random.split(key, 32))
    nrm = lambda shape, s=0.1: (s * jax.random.normal(next(ks), shape)).astype(jnp.float32)
    params = {
        "H": H,
        "atom_emb": nrm((118, H), 1.0),
        "mlp_w1": nrm((1, H)),
        "mlp_w2": nrm((H, 2 * H)),
        "mlp_w3": nrm((2 * H, H)),
        "enc_w": nrm((H, 1)),
        "enc_b": nrm((1, 1)),
        "spec_wv": nrm((H, xas_len)),
        "spec_bv": nrm((1, xas_len)),
        "spec_wg": nrm((H, xas_len)),
        "spec_bg": nrm((1, xas_len)),
        "gnn": [],
    }
    in_dim = 2 * H + edge_dim
    for _ in range(gnn_layers):
        params["gnn"].append({
            "glu_wv": nrm((in_dim, H)),
            "glu_bv": nrm((1, H)),
            "glu_wg": nrm((in_dim, H)),
            "glu_bg": nrm((1, H)),
            "exp": jnp.full((1, 1), -2.0, jnp.float32),   # learnable_exp init
            "eps": jnp.zeros((1, 1), jnp.float32),        # learnable_eps init
        })
    return params


if __name__ == "__main__":
    # small shapes consistent with the module
    H = 32                     # gnn_hidden_dims
    MAX_N, MAX_L = 2, 4        # edge_dim = max_n * max_l**2 = 32
    EDGE_DIM = MAX_N * MAX_L ** 2
    GNN_LAYERS = 3
    XAS_LEN = 100              # XANES
    B = 2                      # graphs in the batch
    NODES_PER_GRAPH = 4
    N = B * NODES_PER_GRAPH

    key = jax.random.PRNGKey(0)
    kp, ka, ks, kl, ke = jax.random.split(key, 5)
    params = make_params(kp, H, EDGE_DIM, XAS_LEN, GNN_LAYERS)

    # fully-connected directed graph (no self loops) per batch element
    src_l, dst_l, gid_l = [], [], []
    for g in range(B):
        base = g * NODES_PER_GRAPH
        for i in range(NODES_PER_GRAPH):
            gid_l.append(g)
            for j in range(NODES_PER_GRAPH):
                if i != j:
                    src_l.append(base + i)
                    dst_l.append(base + j)
    src = jnp.array(src_l, jnp.int32)
    dst = jnp.array(dst_l, jnp.int32)
    node_graph_id = jnp.array(gid_l, jnp.int32)
    E = src.shape[0]

    atomic_num = jax.random.randint(ka, (N,), 1, 118)
    spec_atom_index = jax.random.randint(ks, (B,), 1, 118)
    edge_len = jax.random.uniform(kl, (E,), minval=0.5, maxval=5.5)
    # TODO(synk): SphericalBesselWithHarmonics basis is not reimplemented; its
    # real-valued edge features (dim max_n*max_l**2) are synthesized as inputs.
    edge_sbhf = (0.1 * jax.random.normal(ke, (E, EDGE_DIM))).astype(jnp.float32)

    out = xas_forward(params, atomic_num, spec_atom_index, src, dst,
                      edge_len, edge_sbhf, node_graph_id, B)
    out = jax.block_until_ready(out)
    assert out.shape == (B, XAS_LEN) and out.dtype == jnp.float32
    assert bool(jnp.all(jnp.isfinite(out)))
    print("KERNEL_OK")
</pallas_src>

<mosaic_0001>
module attributes {stable_mosaic.version = 11 : i64} {
  func.func @_rr_layer_kernel(%arg0: i32, %arg1: i32, %arg2: memref<2x1xi32, #tpu.memory_space<smem>>, %arg3: memref<2xi32, #tpu.memory_space<smem>>, %arg4: memref<2xi32, #tpu.memory_space<smem>>, %arg5: memref<256x33xbf16, #tpu.memory_space<vmem>>, %arg6: memref<1x256xf32, #tpu.memory_space<vmem>>, %arg7: memref<1x256xi32, #tpu.memory_space<vmem>>, %arg8: memref<1x256xi32, #tpu.memory_space<vmem>>, %arg9: memref<8x32xf32, #tpu.memory_space<vmem>>, %arg10: memref<1x32x32xbf16, #tpu.memory_space<vmem>>, %arg11: memref<128x32xbf16, #tpu.memory_space<vmem>>, %arg12: memref<64x33xbf16, #tpu.memory_space<vmem>>, %arg13: memref<1x32xf32, #tpu.memory_space<vmem>>, %arg14: memref<1x1x32xf32, #tpu.memory_space<vmem>>, %arg15: memref<32x256xf32, #tpu.memory_space<vmem>>, %arg16: memref<1x256xf32, #tpu.memory_space<vmem>>, %arg17: memref<1xf32, #tpu.memory_space<smem>>, %arg18: memref<1xf32, #tpu.memory_space<smem>>, %arg19: memref<1xf32, #tpu.memory_space<smem>>, %arg20: memref<8x32xf32, #tpu.memory_space<vmem>>, %arg21: memref<1x1x32xf32, #tpu.memory_space<vmem>>, %arg22: memref<1x1x128xf32, #tpu.memory_space<vmem>>, %arg23: memref<8x32xf32, #tpu.memory_space<vmem>>, %arg24: memref<128x8xf32, #tpu.memory_space<vmem>>) attributes {dimension_semantics = [#tpu.dimension_semantics<parallel>, #tpu.dimension_semantics<arbitrary>], iteration_bounds = array<i64: 2, 1>, scalar_prefetch = 3 : i64, scratch_operands = 2 : i64, tpu.core_type = #tpu.core_type<tc>, window_params = [{transform_indices = @transform_0, window_bounds = array<i64: 256, 33>}, {transform_indices = @transform_1, window_bounds = array<i64: 1, 256>}, {transform_indices = @transform_2, window_bounds = array<i64: 1, 256>}, {transform_indices = @transform_3, window_bounds = array<i64: 1, 256>}, {transform_indices = @transform_4, window_bounds = array<i64: 8, 32>}, {transform_indices = @transform_5, window_bounds = array<i64: 1, 32, 32>}, {pipeline_mode = #tpu.pipeline_mode<synchronous>, transform_indices = @transform_6, window_bounds = array<i64: 128, 32>}, {pipeline_mode = #tpu.pipeline_mode<synchronous>, transform_indices = @transform_7, window_bounds = array<i64: 64, 33>}, {pipeline_mode = #tpu.pipeline_mode<synchronous>, transform_indices = @transform_8, window_bounds = array<i64: 1, 32>}, {transform_indices = @transform_9, window_bounds = array<i64: 1, 1, 32>}, {pipeline_mode = #tpu.pipeline_mode<synchronous>, transform_indices = @transform_10, window_bounds = array<i64: 32, 256>}, {pipeline_mode = #tpu.pipeline_mode<synchronous>, transform_indices = @transform_11, window_bounds = array<i64: 1, 256>}, {transform_indices = @transform_12, window_bounds = array<i64: 1>}, {transform_indices = @transform_13, window_bounds = array<i64: 1>}, {transform_indices = @transform_14, window_bounds = array<i64: 1>}, {transform_indices = @transform_15, window_bounds = array<i64: 8, 32>}, {transform_indices = @transform_16, window_bounds = array<i64: 1, 1, 32>}, {transform_indices = @transform_17, window_bounds = array<i64: 1, 1, 128>}]} {
    %c0_i32 = arith.constant 0 : i32
    %0 = arith.cmpi eq, %arg1, %c0_i32 : i32
    %1 = arith.extui %0 : i1 to i32
    %c0_i32_0 = arith.constant 0 : i32
    %2 = arith.cmpi ne, %1, %c0_i32_0 : i32
    scf.if %2 {
      %cst = arith.constant 0.000000e+00 : f32
      %11 = vector.broadcast %cst : f32 to vector<8x32xf32>
      %c0 = arith.constant 0 : index
      %c0_4 = arith.constant 0 : index
      %12 = vector.load %arg23[%c0, %c0_4] : memref<8x32xf32, #tpu.memory_space<vmem>>, vector<8x32xf32>
      tpu.vector_store %arg23[%c0, %c0_4], %11 {strides = array<i32>} : memref<8x32xf32, #tpu.memory_space<vmem>>, vector<8x32xf32>,
      %c0_5 = arith.constant 0 : index
      %c0_6 = arith.constant 0 : index
      %13 = vector.load %arg11[%c0_5, %c0_6] : memref<128x32xbf16, #tpu.memory_space<vmem>>, vector<128x32xbf16>
      %c0_7 = arith.constant 0 : index
      %c0_8 = arith.constant 0 : index
      %14 = vector.load %arg9[%c0_7, %c0_8] : memref<8x32xf32, #tpu.memory_space<vmem>>, vector<8x32xf32>
      %15 = arith.truncf %14 : vector<8x32xf32> to vector<8x32xbf16>
      %cst_9 = arith.constant dense<0.000000e+00> : vector<128x8xf32>
      %16 = tpu.matmul %13, %15, %cst_9 {dimension_numbers = #tpu.dot_dimension_numbers<[1], [1], [0], [0], [0, 0, 1, 0], [], []>} : vector<128x32xbf16>, vector<8x32xbf16>, vector<128x8xf32> -> vector<128x8xf32>
      %c0_10 = arith.constant 0 : index
      %c0_11 = arith.constant 0 : index
      %17 = vector.load %arg24[%c0_10, %c0_11] : memref<128x8xf32, #tpu.memory_space<vmem>>, vector<128x8xf32>
      tpu.vector_store %arg24[%c0_10, %c0_11], %16 {strides = array<i32>} : memref<128x8xf32, #tpu.memory_space<vmem>>, vector<128x8xf32>,
    } else {
    }
    %3 = arith.index_cast %arg0 : i32 to index
    %4 = memref.load %arg3[%3] : memref<2xi32, #tpu.memory_space<smem>>
    %5 = arith.cmpi slt, %arg1, %4 : i32
    %6 = arith.extui %5 : i1 to i32
    %c0_i32_1 = arith.constant 0 : i32
    %7 = arith.cmpi ne, %6, %c0_i32_1 : i32
    scf.if %7 {
      %c0 = arith.constant 0 : index
      %c0_4 = arith.constant 0 : index
      %11 = vector.load %arg12[%c0, %c0_4] : memref<64x33xbf16, #tpu.memory_space<vmem>>, vector<64x33xbf16>
      %c0_5 = arith.constant 0 : index
      %c0_6 = arith.constant 0 : index
      %12 = vector.load %arg5[%c0_5, %c0_6] : memref<256x33xbf16, #tpu.memory_space<vmem>>, vector<256x33xbf16>
      %cst = arith.constant dense<0.000000e+00> : vector<64x256xf32>
      %13 = tpu.matmul %11, %12, %cst {dimension_numbers = #tpu.dot_dimension_numbers<[1], [1], [0], [0], [0, 0, 1, 0], [], []>} : vector<64x33xbf16>, vector<256x33xbf16>, vector<64x256xf32> -> vector<64x256xf32>
      %c8_i32 = arith.constant 8 : i32
      %14 = arith.muli %arg0, %c8_i32 : i32
      %15 = tpu.iota {dimensions = array<i32: 0>} : vector<8x256xi32>
      %16 = vector.broadcast %14 : i32 to vector<8x256xi32>
      %17 = arith.addi %16, %15 : vector<8x256xi32>
      %c0_7 = arith.constant 0 : index
      %c0_8 = arith.constant 0 : index
      %18 = vector.load %arg7[%c0_7, %c0_8] : memref<1x256xi32, #tpu.memory_space<vmem>>, vector<1x256xi32>
      %19 = vector.broadcast %18 : vector<1x256xi32> to vector<8x256xi32>
      %20 = arith.cmpi eq, %19, %17 : vector<8x256xi32>
      %21 = arith.extui %20 : vector<8x256xi1> to vector<8x256xi32>
      %22 = arith.sitofp %21 : vector<8x256xi32> to vector<8x256xf32>
      %23 = arith.truncf %22 : vector<8x256xf32> to vector<8x256xbf16>
      %c0_9 = arith.constant 0 : index
      %c0_10 = arith.constant 0 : index
      %24 = vector.load %arg8[%c0_9, %c0_10] : memref<1x256xi32, #tpu.memory_space<vmem>>, vector<1x256xi32>
      %25 = vector.broadcast %24 : vector<1x256xi32> to vector<8x256xi32>
      %26 = arith.cmpi eq, %25, %17 : vector<8x256xi32>
      %27 = arith.extui %26 : vector<8x256xi1> to vector<8x256xi32>
      %28 = arith.sitofp %27 : vector<8x256xi32> to vector<8x256xf32>
      %29 = arith.truncf %28 : vector<8x256xf32> to vector<8x256xbf16>
      %c0_11 = arith.constant 0 : index
      %c0_12 = arith.constant 0 : index
      %30 = vector.load %arg24[%c0_11, %c0_12] : memref<128x8xf32, #tpu.memory_space<vmem>>, vector<128x8xf32>
      %31 = arith.truncf %30 : vector<128x8xf32> to vector<128x8xbf16>
      %32 = vector.extract_strided_slice %31 {offsets = [0, 0], sizes = [64, 8], strides = [1, 1]} : vector<128x8xbf16> to vector<64x8xbf16>
      %cst_13 = arith.constant dense<0.000000e+00> : vector<64x256xf32>
      %33 = tpu.matmul %32, %23, %cst_13 {dimension_numbers = #tpu.dot_dimension_numbers<[1], [0], [0], [1], [0, 0, 1, 1], [], []>} : vector<64x8xbf16>, vector<8x256xbf16>, vector<64x256xf32> -> vector<64x256xf32>
      %34 = arith.addf %13, %33 : vector<64x256xf32>
      %35 = vector.extract_strided_slice %31 {offsets = [64, 0], sizes = [64, 8], strides = [1, 1]} : vector<128x8xbf16> to vector<64x8xbf16>
      %cst_14 = arith.constant dense<0.000000e+00> : vector<64x256xf32>
      %36 = tpu.matmul %35, %29, %cst_14 {dimension_numbers = #tpu.dot_dimension_numbers<[1], [0], [0], [1], [0, 0, 1, 1], [], []>} : vector<64x8xbf16>, vector<8x256xbf16>, vector<64x256xf32> -> vector<64x256xf32>
      %37 = arith.addf %34, %36 : vector<64x256xf32>
      %38 = vector.extract_strided_slice %37 {offsets = [0, 0], sizes = [32, 256], strides = [1, 1]} : vector<64x256xf32> to vector<32x256xf32>
      %39 = vector.extract_strided_slice %37 {offsets = [32, 0], sizes = [32, 256], strides = [1, 1]} : vector<64x256xf32> to vector<32x256xf32>
      %40 = arith.negf %39 : vector<32x256xf32>
      %41 = math.exp %40 : vector<32x256xf32>
      %cst_15 = arith.constant 1.000000e+00 : f32
      %42 = vector.broadcast %cst_15 : f32 to vector<32x256xf32>
      %43 = arith.addf %42, %41 : vector<32x256xf32>
      %44 = arith.divf %42, %43 : vector<32x256xf32>
      %45 = arith.mulf %38, %44 : vector<32x256xf32>
      %c0_16 = arith.constant 0 : index
      %c0_17 = arith.constant 0 : index
      %46 = vector.load %arg6[%c0_16, %c0_17] : memref<1x256xf32, #tpu.memory_space<vmem>>, vector<1x256xf32>
      %47 = math.log %46 : vector<1x256xf32>
      %c0_18 = arith.constant 0 : index
      %48 = memref.load %arg18[%c0_18] : memref<1xf32, #tpu.memory_space<smem>>
      %49 = vector.broadcast %48 : f32 to vector<1x256xf32>
      %50 = arith.mulf %47, %49 : vector<1x256xf32>
      %51 = math.exp %50 : vector<1x256xf32>
      %52 = vector.broadcast %51 : vector<1x256xf32> to vector<32x256xf32>
      %53 = arith.mulf %45, %52 : vector<32x256xf32>
      %c0_19 = arith.constant 0 : index
      %c0_20 = arith.constant 0 : index
      %54 = vector.load %arg23[%c0_19, %c0_20] : memref<8x32xf32, #tpu.memory_space<vmem>>, vector<8x32xf32>
      %55 = arith.truncf %53 : vector<32x256xf32> to vector<32x256xbf16>
      %cst_21 = arith.constant dense<0.000000e+00> : vector<8x32xf32>
      %56 = tpu.matmul %29, %55, %cst_21 {dimension_numbers = #tpu.dot_dimension_numbers<[1], [1], [0], [0], [0, 0, 1, 0], [], []>} : vector<8x256xbf16>, vector<32x256xbf16>, vector<8x32xf32> -> vector<8x32xf32>
      %57 = arith.addf %54, %56 : vector<8x32xf32>
      %c0_22 = arith.constant 0 : index
      %c0_23 = arith.constant 0 : index
      %58 = vector.load %arg23[%c0_22, %c0_23] : memref<8x32xf32, #tpu.memory_space<vmem>>, vector<8x32xf32>
      tpu.vector_store %arg23[%c0_22, %c0_23], %57 {strides = array<i32>} : memref<8x32xf32, #tpu.memory_space<vmem>>, vector<8x32xf32>,
    } else {
    }
    %c0_i32_2 = arith.constant 0 : i32
    %8 = arith.cmpi eq, %arg1, %c0_i32_2 : i32
    %9 = arith.extui %8 : i1 to i32
    %c0_i32_3 = arith.constant 0 : i32
    %10 = arith.cmpi ne, %9, %c0_i32_3 : i32
    scf.if %10 {
      %c0 = arith.constant 0 : index
      %11 = memref.load %arg17[%c0] : memref<1xf32, #tpu.memory_space<smem>>
      %cst = arith.constant 1.000000e+00 : f32
      %12 = arith.addf %cst, %11 : f32
      %c0_4 = arith.constant 0 : index
      %c0_5 = arith.constant 0 : index
      %13 = vector.load %arg9[%c0_4, %c0_5] : memref<8x32xf32, #tpu.memory_space<vmem>>, vector<8x32xf32>
      %14 = vector.broadcast %12 : f32 to vector<8x32xf32>
      %15 = arith.mulf %14, %13 : vector<8x32xf32>
      %c0_6 = arith.constant 0 : index
      %c0_7 = arith.constant 0 : index
      %16 = vector.load %arg23[%c0_6, %c0_7] : memref<8x32xf32, #tpu.memory_space<vmem>>, vector<8x32xf32>
      %17 = arith.addf %15, %16 : vector<8x32xf32>
      %c0_8 = arith.constant 0 : index
      %c0_9 = arith.constant 0 : index
      %18 = vector.load %arg20[%c0_8, %c0_9] : memref<8x32xf32, #tpu.memory_space<vmem>>, vector<8x32xf32>
      tpu.vector_store %arg20[%c0_8, %c0_9], %17 {strides = array<i32>} : memref<8x32xf32, #tpu.memory_space<vmem>>, vector<8x32xf32>,
      %19 = arith.truncf %17 : vector<8x32xf32> to vector<8x32xbf16>
      %c0_10 = arith.constant 0 : index
      %c0_11 = arith.constant 0 : index
      %c0_12 = arith.constant 0 : index
      %20 = vector.load %arg10[%c0_10, %c0_11, %c0_12] : memref<1x32x32xbf16, #tpu.memory_space<vmem>>, vector<1x32x32xbf16>
      %21 = vector.shape_cast %20 : vector<1x32x32xbf16> to vector<32x32xbf16>
      %cst_13 = arith.constant dense<0.000000e+00> : vector<8x32xf32>
      %22 = tpu.matmul %19, %21, %cst_13 {dimension_numbers = #tpu.dot_dimension_numbers<[1], [1], [0], [0], [0, 0, 1, 0], [], []>} : vector<8x32xbf16>, vector<32x32xbf16>, vector<8x32xf32> -> vector<8x32xf32>
      %cst_14 = arith.constant 0.176776692 : f32
      %23 = vector.broadcast %cst_14 : f32 to vector<8x32xf32>
      %24 = arith.mulf %22, %23 : vector<8x32xf32>
      %25 = tpu.iota {dimensions = array<i32: 0>} : vector<8x32xi32>
      %26 = arith.index_cast %arg0 : i32 to index
      %27 = memref.load %arg4[%26] : memref<2xi32, #tpu.memory_space<smem>>
      %28 = vector.broadcast %27 : i32 to vector<8x32xi32>
      %29 = arith.cmpi slt, %25, %28 : vector<8x32xi32>
      %cst_15 = arith.constant -1.000000e+30 : f32
      %30 = vector.broadcast %cst_15 : f32 to vector<8x32xf32>
      %31 = arith.select %29, %24, %30 : vector<8x32xi1>, vector<8x32xf32>
      %cst_16 = arith.constant dense<0xFF800000> : vector<32xf32>
      %32 = vector.multi_reduction <maximumf>, %31, %cst_16 [0] : vector<8x32xf32> to vector<32xf32>
      %33 = vector.shape_cast %32 : vector<32xf32> to vector<1x32xf32>
      %34 = vector.broadcast %33 : vector<1x32xf32> to vector<8x32xf32>
      %35 = arith.subf %31, %34 : vector<8x32xf32>
      %36 = math.exp %35 : vector<8x32xf32>
      %cst_17 = arith.constant dense<0.000000e+00> : vector<32xf32>
      %37 = vector.multi_reduction <add>, %36, %cst_17 [0] : vector<8x32xf32> to vector<32xf32>
      %38 = vector.shape_cast %37 : vector<32xf32> to vector<1x32xf32>
      %39 = vector.broadcast %38 : vector<1x32xf32> to vector<8x32xf32>
      %40 = arith.divf %36, %39 : vector<8x32xf32>
      %c0_18 = arith.constant 0 : index
      %c0_19 = arith.constant 0 : index
      %41 = vector.load %arg13[%c0_18, %c0_19] : memref<1x32xf32, #tpu.memory_space<vmem>>, vector<1x32xf32>
      %42 = vector.broadcast %41 : vector<1x32xf32> to vector<8x32xf32>
      %43 = arith.mulf %17, %42 : vector<8x32xf32>
      %cst_20 = arith.constant dense<0.000000e+00> : vector<8xf32>
      %44 = vector.multi_reduction <add>, %43, %cst_20 [1] : vector<8x32xf32> to vector<8xf32>
      %45 = vector.shape_cast %44 : vector<8xf32> to vector<8x1xf32>
      %46 = vector.broadcast %45 : vector<8x1xf32> to vector<8x32xf32>
      %47 = arith.mulf %40, %46 : vector<8x32xf32>
      %cst_21 = arith.constant dense<0.000000e+00> : vector<32xf32>
      %48 = vector.multi_reduction <add>, %47, %cst_21 [0] : vector<8x32xf32> to vector<32xf32>
      %49 = vector.shape_cast %48 : vector<32xf32> to vector<1x32xf32>
      %c0_22 = arith.constant 0 : index
      %c0_23 = arith.constant 0 : index
      %c0_24 = arith.constant 0 : index
      %50 = vector.load %arg14[%c0_22, %c0_23, %c0_24] : memref<1x1x32xf32, #tpu.memory_space<vmem>>, vector<1x1x32xf32>
      %51 = vector.shape_cast %50 : vector<1x1x32xf32> to vector<1x32xf32>
      %52 = arith.addf %51, %49 : vector<1x32xf32>
      %c0_25 = arith.constant 0 : index
      %53 = memref.load %arg19[%c0_25] : memref<1xf32, #tpu.memory_space<smem>>
      %54 = vector.broadcast %53 : f32 to vector<1x32xf32>
      %55 = arith.addf %52, %54 : vector<1x32xf32>
      %c0_26 = arith.constant 0 : index
      %c0_27 = arith.constant 0 : index
      %c0_28 = arith.constant 0 : index
      %56 = vector.load %arg21[%c0_26, %c0_27, %c0_28] : memref<1x1x32xf32, #tpu.memory_space<vmem>>, vector<1x1x32xf32>
      %57 = vector.shape_cast %56 : vector<1x1x32xf32> to vector<1x32xf32>
      %58 = vector.shape_cast %55 : vector<1x32xf32> to vector<1x1x32xf32>
      tpu.vector_store %arg21[%c0_26, %c0_27, %c0_28], %58 {strides = array<i32>} : memref<1x1x32xf32, #tpu.memory_space<vmem>>, vector<1x1x32xf32>,
      %c0_29 = arith.constant 0 : index
      %c0_30 = arith.constant 0 : index
      %59 = vector.load %arg15[%c0_29, %c0_30] : memref<32x256xf32, #tpu.memory_space<vmem>>, vector<32x256xf32>
      %cst_31 = arith.constant dense<0.000000e+00> : vector<1x256xf32>
      %60 = tpu.matmul %55, %59, %cst_31 {dimension_numbers = #tpu.dot_dimension_numbers<[1], [0], [0], [1], [0, 0, 1, 1], [], []>} : vector<1x32xf32>, vector<32x256xf32>, vector<1x256xf32> -> vector<1x256xf32>
      %c0_32 = arith.constant 0 : index
      %c0_33 = arith.constant 0 : index
      %61 = vector.load %arg16[%c0_32, %c0_33] : memref<1x256xf32, #tpu.memory_space<vmem>>, vector<1x256xf32>
      %62 = arith.addf %60, %61 : vector<1x256xf32>
      %63 = vector.extract_strided_slice %62 {offsets = [0, 0], sizes = [1, 128], strides = [1, 1]} : vector<1x256xf32> to vector<1x128xf32>
      %64 = vector.extract_strided_slice %62 {offsets = [0, 128], sizes = [1, 128], strides = [1, 1]} : vector<1x256xf32> to vector<1x128xf32>
      %65 = arith.negf %64 : vector<1x128xf32>
      %66 = math.exp %65 : vector<1x128xf32>
      %cst_34 = arith.constant 1.000000e+00 : f32
      %67 = vector.broadcast %cst_34 : f32 to vector<1x128xf32>
      %68 = arith.addf %67, %66 : vector<1x128xf32>
      %69 = arith.divf %67, %68 : vector<1x128xf32>
      %70 = arith.mulf %63, %69 : vector<1x128xf32>
      %c0_35 = arith.constant 0 : index
      %c0_36 = arith.constant 0 : index
      %c0_37 = arith.constant 0 : index
      %71 = vector.load %arg22[%c0_35, %c0_36, %c0_37] : memref<1x1x128xf32, #tpu.memory_space<vmem>>, vector<1x1x128xf32>
      %72 = vector.shape_cast %71 : vector<1x1x128xf32> to vector<1x128xf32>
      %73 = vector.shape_cast %70 : vector<1x128xf32> to vector<1x1x128xf32>
      tpu.vector_store %arg22[%c0_35, %c0_36, %c0_37], %73 {strides = array<i32>} : memref<1x1x128xf32, #tpu.memory_space<vmem>>, vector<1x1x128xf32>,
    } else {
    }
    return
  }
  func.func @transform_0(%arg0: i32, %arg1: i32, %arg2: memref<2x1xi32, #tpu.memory_space<smem>>, %arg3: memref<2xi32, #tpu.memory_space<smem>>, %arg4: memref<2xi32, #tpu.memory_space<smem>>) -> (i32, i32) {
    %0 = arith.index_cast %arg0 : i32 to index
    %1 = arith.index_cast %arg1 : i32 to index
    %2 = memref.load %arg2[%0, %1] : memref<2x1xi32, #tpu.memory_space<smem>>
    %c0_i32 = arith.constant 0 : i32
    %c0_i32_0 = arith.constant 0 : i32
    return %2, %c0_i32 : i32, i32
  }
  func.func @transform_1(%arg0: i32, %arg1: i32, %arg2: memref<2x1xi32, #tpu.memory_space<smem>>, %arg3: memref<2xi32, #tpu.memory_space<smem>>, %arg4: memref<2xi32, #tpu.memory_space<smem>>) -> (i32, i32) {
    %0 = arith.index_cast %arg0 : i32 to index
    %1 = arith.index_cast %arg1 : i32 to index
    %2 = memref.load %arg2[%0, %1] : memref<2x1xi32, #tpu.memory_space<smem>>
    %c0_i32 = arith.constant 0 : i32
    %c0_i32_0 = arith.constant 0 : i32
    return %c0_i32, %2 : i32, i32
  }
  func.func @transform_2(%arg0: i32, %arg1: i32, %arg2: memref<2x1xi32, #tpu.memory_space<smem>>, %arg3: memref<2xi32, #tpu.memory_space<smem>>, %arg4: memref<2xi32, #tpu.memory_space<smem>>) -> (i32, i32) {
    %0 = arith.index_cast %arg0 : i32 to index
    %1 = arith.index_cast %arg1 : i32 to index
    %2 = memref.load %arg2[%0, %1] : memref<2x1xi32, #tpu.memory_space<smem>>
    %c0_i32 = arith.constant 0 : i32
    %c0_i32_0 = arith.constant 0 : i32
    return %c0_i32, %2 : i32, i32
  }
  func.func @transform_3(%arg0: i32, %arg1: i32, %arg2: memref<2x1xi32, #tpu.memory_space<smem>>, %arg3: memref<2xi32, #tpu.memory_space<smem>>, %arg4: memref<2xi32, #tpu.memory_space<smem>>) -> (i32, i32) {
    %0 = arith.index_cast %arg0 : i32 to index
    %1 = arith.index_cast %arg1 : i32 to index
    %2 = memref.load %arg2[%0, %1] : memref<2x1xi32, #tpu.memory_space<smem>>
    %c0_i32 = arith.constant 0 : i32
    %c0_i32_0 = arith.constant 0 : i32
    return %c0_i32, %2 : i32, i32
  }
  func.func @transform_4(%arg0: i32, %arg1: i32, %arg2: memref<2x1xi32, #tpu.memory_space<smem>>, %arg3: memref<2xi32, #tpu.memory_space<smem>>, %arg4: memref<2xi32, #tpu.memory_space<smem>>) -> (i32, i32) {
    %c0_i32 = arith.constant 0 : i32
    %c0_i32_0 = arith.constant 0 : i32
    return %arg0, %c0_i32 : i32, i32
  }
  func.func @transform_5(%arg0: i32, %arg1: i32, %arg2: memref<2x1xi32, #tpu.memory_space<smem>>, %arg3: memref<2xi32, #tpu.memory_space<smem>>, %arg4: memref<2xi32, #tpu.memory_space<smem>>) -> (i32, i32, i32) {
    %c0_i32 = arith.constant 0 : i32
    %c0_i32_0 = arith.constant 0 : i32
    %c0_i32_1 = arith.constant 0 : i32
    return %arg0, %c0_i32, %c0_i32_0 : i32, i32, i32
  }
  func.func @transform_6(%arg0: i32, %arg1: i32, %arg2: memref<2x1xi32, #tpu.memory_space<smem>>, %arg3: memref<2xi32, #tpu.memory_space<smem>>, %arg4: memref<2xi32, #tpu.memory_space<smem>>) -> (i32, i32) {
    %c0_i32 = arith.constant 0 : i32
    %c0_i32_0 = arith.constant 0 : i32
    %c0_i32_1 = arith.constant 0 : i32
    return %c0_i32, %c0_i32_0 : i32, i32
  }
  func.func @transform_7(%arg0: i32, %arg1: i32, %arg2: memref<2x1xi32, #tpu.memory_space<smem>>, %arg3: memref<2xi32, #tpu.memory_space<smem>>, %arg4: memref<2xi32, #tpu.memory_space<smem>>) -> (i32, i32) {
    %c0_i32 = arith.constant 0 : i32
    %c0_i32_0 = arith.constant 0 : i32
    %c0_i32_1 = arith.constant 0 : i32
    return %c0_i32, %c0_i32_0 : i32, i32
  }
  func.func @transform_8(%arg0: i32, %arg1: i32, %arg2: memref<2x1xi32, #tpu.memory_space<smem>>, %arg3: memref<2xi32, #tpu.memory_space<smem>>, %arg4: memref<2xi32, #tpu.memory_space<smem>>) -> (i32, i32) {
    %c0_i32 = arith.constant 0 : i32
    %c0_i32_0 = arith.constant 0 : i32
    %c0_i32_1 = arith.constant 0 : i32
    return %c0_i32, %c0_i32_0 : i32, i32
  }
  func.func @transform_9(%arg0: i32, %arg1: i32, %arg2: memref<2x1xi32, #tpu.memory_space<smem>>, %arg3: memref<2xi32, #tpu.memory_space<smem>>, %arg4: memref<2xi32, #tpu.memory_space<smem>>) -> (i32, i32, i32) {
    %c0_i32 = arith.constant 0 : i32
    %c0_i32_0 = arith.constant 0 : i32
    %c0_i32_1 = arith.constant 0 : i32
    return %arg0, %c0_i32, %c0_i32_0 : i32, i32, i32
  }
  func.func @transform_10(%arg0: i32, %arg1: i32, %arg2: memref<2x1xi32, #tpu.memory_space<smem>>, %arg3: memref<2xi32, #tpu.memory_space<smem>>, %arg4: memref<2xi32, #tpu.memory_space<smem>>) -> (i32, i32) {
    %c0_i32 = arith.constant 0 : i32
    %c0_i32_0 = arith.constant 0 : i32
    %c0_i32_1 = arith.constant 0 : i32
    return %c0_i32, %c0_i32_0 : i32, i32
  }
  func.func @transform_11(%arg0: i32, %arg1: i32, %arg2: memref<2x1xi32, #tpu.memory_space<smem>>, %arg3: memref<2xi32, #tpu.memory_space<smem>>, %arg4: memref<2xi32, #tpu.memory_space<smem>>) -> (i32, i32) {
    %c0_i32 = arith.constant 0 : i32
    %c0_i32_0 = arith.constant 0 : i32
    %c0_i32_1 = arith.constant 0 : i32
    return %c0_i32, %c0_i32_0 : i32, i32
  }
  func.func @transform_12(%arg0: i32, %arg1: i32, %arg2: memref<2x1xi32, #tpu.memory_space<smem>>, %arg3: memref<2xi32, #tpu.memory_space<smem>>, %arg4: memref<2xi32, #tpu.memory_space<smem>>) -> i32 {
    %c0_i32 = arith.constant 0 : i32
    %c0_i32_0 = arith.constant 0 : i32
    return %c0_i32 : i32
  }
  func.func @transform_13(%arg0: i32, %arg1: i32, %arg2: memref<2x1xi32, #tpu.memory_space<smem>>, %arg3: memref<2xi32, #tpu.memory_space<smem>>, %arg4: memref<2xi32, #tpu.memory_space<smem>>) -> i32 {
    %c0_i32 = arith.constant 0 : i32
    %c0_i32_0 = arith.constant 0 : i32
    return %c0_i32 : i32
  }
  func.func @transform_14(%arg0: i32, %arg1: i32, %arg2: memref<2x1xi32, #tpu.memory_space<smem>>, %arg3: memref<2xi32, #tpu.memory_space<smem>>, %arg4: memref<2xi32, #tpu.memory_space<smem>>) -> i32 {
    %c0_i32 = arith.constant 0 : i32
    %c0_i32_0 = arith.constant 0 : i32
    return %c0_i32 : i32
  }
  func.func @transform_15(%arg0: i32, %arg1: i32, %arg2: memref<2x1xi32, #tpu.memory_space<smem>>, %arg3: memref<2xi32, #tpu.memory_space<smem>>, %arg4: memref<2xi32, #tpu.memory_space<smem>>) -> (i32, i32) {
    %c0_i32 = arith.constant 0 : i32
    %c0_i32_0 = arith.constant 0 : i32
    return %arg0, %c0_i32 : i32, i32
  }
  func.func @transform_16(%arg0: i32, %arg1: i32, %arg2: memref<2x1xi32, #tpu.memory_space<smem>>, %arg3: memref<2xi32, #tpu.memory_space<smem>>, %arg4: memref<2xi32, #tpu.memory_space<smem>>) -> (i32, i32, i32) {
    %c0_i32 = arith.constant 0 : i32
    %c0_i32_0 = arith.constant 0 : i32
    %c0_i32_1 = arith.constant 0 : i32
    return %arg0, %c0_i32, %c0_i32_0 : i32, i32, i32
  }
  func.func @transform_17(%arg0: i32, %arg1: i32, %arg2: memref<2x1xi32, #tpu.memory_space<smem>>, %arg3: memref<2xi32, #tpu.memory_space<smem>>, %arg4: memref<2xi32, #tpu.memory_space<smem>>) -> (i32, i32, i32) {
    %c0_i32 = arith.constant 0 : i32
    %c0_i32_0 = arith.constant 0 : i32
    %c0_i32_1 = arith.constant 0 : i32
    return %arg0, %c0_i32, %c0_i32_0 : i32, i32, i32
  }
}

</mosaic_0001>

<bundles_post_ra>
// kernel: _forward_core.3
= control target key start
LH: loop header
LB: loop body
LE: loop exit
PB: predicated region body
PF: predicated region fallthrough
CT: control target
= control target key end

     0   :  { %s3277_s0 = inlined_call_operand.vmem [shape: s32[2,1], index: 0, kind: input, shape index: {}]   ;;  %s3278_s3 = inlined_call_operand.vmem [shape: bf16[512,33], index: 3, kind: input, shape index: {}]   ;;  %s3279_s4 = inlined_call_operand.vmem [shape: f32[1,512], index: 4, kind: input, shape index: {}]   ;;  %s3280_s5 = inlined_call_operand.vmem [shape: s32[1,512], index: 5, kind: input, shape index: {}]   ;;  %s3281_s6 = inlined_call_operand.vmem [shape: s32[1,512], index: 6, kind: input, shape index: {}]   ;;  %s3282_s7 = inlined_call_operand.vmem [shape: f32[16,32], index: 7, kind: input, shape index: {}, may-alias: {7,18}]   ;;  %s3283_s8 = inlined_call_operand.vmem [shape: bf16[2,32,32], index: 8, kind: input, shape index: {}]   ;;  %s3284_s9 = inlined_call_operand.vmem [shape: bf16[128,32], index: 9, kind: input, shape index: {}]   ;;  %s3285_s10 = inlined_call_operand.vmem [shape: bf16[64,33], index: 10, kind: input, shape index: {}]   ;;  %s3286_s11 = inlined_call_operand.vmem [shape: f32[1,32], index: 11, kind: input, shape index: {}]   ;;  %s3287_s12 = inlined_call_operand.vmem [shape: f32[2,1,32], index: 12, kind: input, shape index: {}, may-alias: {12,19}]   ;;  %s3288_s13 = inlined_call_operand.vmem [shape: f32[32,256], index: 13, kind: input, shape index: {}]   ;;  %s3289_s14 = inlined_call_operand.vmem [shape: f32[1,256], index: 14, kind: input, shape index: {}]   ;;  %s3290_s18 = inlined_call_operand.vmem [shape: f32[16,32], index: 18, kind: output, shape index: {0}, may-alias: {7,18}]   ;;  %s3291_s19 = inlined_call_operand.vmem [shape: f32[2,1,32], index: 19, kind: output, shape index: {1}, may-alias: {12,19}]   ;;  %s3292_s20 = inlined_call_operand.hbm [shape: f32[2,1,128], index: 20, kind: output, shape index: {2}]   ;;  %s3293_s1 = inlined_call_operand.vmem [shape: s32[2], index: 1, kind: input, shape index: {}]   ;;  %s3294_s2 = inlined_call_operand.vmem [shape: s32[2], index: 2, kind: input, shape index: {}]   ;;  %s3295_s15 = inlined_call_operand.<no memory space> [shape: f32[1], index: 15, kind: input, shape index: {}]   ;;  %s3296_s16 = inlined_call_operand.<no memory space> [shape: f32[1], index: 16, kind: input, shape index: {}]   ;;  %s3297_s17 = inlined_call_operand.<no memory space> [shape: f32[1], index: 17, kind: input, shape index: {}]  }
   0x1   :  { %3309 = sst [smem:[#allocation23_spill]] %s3277_s0  ;;  %s30_s25 = sshll.u32 %s3293_s1, 4  ;;  %s31_s25 = int_to_ptr.vmem [resolvable:$true] %s30_s25 }
   0x2   :  { %3310 = sst [smem:[#allocation24_spill]] %s3278_s3  ;;  %s3317_s23 = sld [smem:[#allocation23_spill]] }
   0x3   :  { %3311 = sst [smem:[#allocation25_spill]] %s3279_s4 }
   0x4   :  { %3312 = sst [smem:[#allocation26_spill]] %s3280_s5 }
   0x5   :  { %3313 = sst [smem:[#allocation27_spill]] %s3281_s6 }
   0x6   :  { %3314 = sst [smem:[#allocation28_spill]] %s3288_s13 }
   0x7   :  { %3315 = sst [smem:[#allocation29_spill]] %s3289_s14 }
   0x8   :  { %3316 = sst [smem:[#allocation30_spill]] %s3292_s20  ;;  %s26_s14 = sshll.u32 %s3317_s23, 4  ;;  %s27_s14 = int_to_ptr.vmem [resolvable:$true] %s26_s14 }
   0x9   :  { %s2588_s5 = scalar_lea.vmem %s27_s14, 32  ;;  %p2593_p1 = scmp.lt.s32.totalorder %s27_s14, %s27_s14 }
   0xa   :  { %p2589_p0 = scmp.ne.s32.totalorder %s27_s14, %s2588_s5  ;;  %p2594_p2 = scmp.lt.s32.totalorder %s2588_s5, %s2588_s5 }
   0xc   :  { %p2595_p3 = por %p2594_p2, %p2593_p1 }
   0xe   :  { %p2596_p4 = pnand %p2595_p3, %p2589_p0 }
  0x10   :  { %2599 = shalt.err (!%p2596_p4)  }
  0x11   :  { %s2706_s26 = smov [#allocation5]   ;;  %s2600_s27 = scalar_lea.vmem %s31_s25, 16 }
  0x12   :  { %29 = dma.vmem_to_smem %s27_s14, 32, %s2706_s26, [#allocation4] }
  0x13   :  { %p2601_p5 = scmp.ne.s32.totalorder %s31_s25, %s2600_s27  ;;  %p2605_p6 = scmp.lt.s32.totalorder %s31_s25, %s31_s25 }
  0x14   :  { %p2606_p7 = scmp.lt.s32.totalorder %s2600_s27, %s2600_s27 }
  0x16   :  { %p2607_p8 = por %p2606_p7, %p2605_p6 }
  0x18   :  { %p2608_p9 = pnand %p2607_p8, %p2601_p5 }
  0x1a   :  { %2611 = shalt.err (!%p2608_p9)  }
  0x1b   :  { %s2707_s28 = smov [#allocation6]   ;;  %s34_s29 = sshll.u32 %s3294_s2, 4  ;;  %s35_s29 = int_to_ptr.vmem [resolvable:$true] %s34_s29 }
  0x1c   :  { %33 = dma.vmem_to_smem %s31_s25, 16, %s2707_s28, [#allocation4] }
  0x1d   :  { %38 = sst [smem:[#allocation8]] %s3295_s15  ;;  %s2612_s21 = scalar_lea.vmem %s35_s29, 16 }
  0x1e   :  { %p2613_p10 = scmp.ne.s32.totalorder %s35_s29, %s2612_s21  ;;  %p2617_p11 = scmp.lt.s32.totalorder %s35_s29, %s35_s29 }
  0x1f   :  { %p2618_p12 = scmp.lt.s32.totalorder %s2612_s21, %s2612_s21 }
  0x21   :  { %p2619_p13 = por %p2618_p12, %p2617_p11 }
  0x23   :  { %p2620_p0 = pnand %p2619_p13, %p2613_p10 }
  0x25   :  { %2623 = shalt.err (!%p2620_p0)  }
  0x26   :  { %s2708_s14 = smov [#allocation7]   ;;  %39 = sst [smem:[#allocation9]] %s3296_s16 }
  0x27   :  { %37 = dma.vmem_to_smem %s35_s29, 16, %s2708_s14, [#allocation4] }
  0x28   :  { %40 = sst [smem:[#allocation10]] %s3297_s17 }
  0x29   :  { %2676 = dma.done.wait [#allocation4], 64 }
  0x2a   :  { %2677 = vsyncadd [#allocation4], 4294967232 }
  0x2b   :  { %42 = sfence }
  0x2c   :  { %43 = vsyncpa [#allocation12], 0 }
  0x2d   :  { %45 = vsyncpa [#allocation12 + $0x1], 0  ;;  %s2838_s15 = smov 0   ;;  %s2840_s24 = smov 0  }
  0x2e   :  { %s2842_s4 = smov 0   ;;  %s2844_s25 = smov 0  }
  0x2f   :  { %s2846_s5 = smov 0   ;;  %s2848_s16 = smov 0  }
  0x30 LB: > { %3318 = sst [smem:[#allocation15_spill]] %s2684_s15  ;;  %s2232_s17 = sadd.s32 4294967295, %s2704_s16   ;;  %s2704_s16 = sphi %s2848_s16, %s51_s16   ;;  %s2700_s5 = sphi %s2846_s5, %s3354_s5   ;;  %s2696_s25 = sphi %s2844_s25, %s3353_s25   ;;  %s2692_s4 = sphi %s2842_s4, %s3352_s4   ;;  %s2688_s24 = sphi %s2840_s24, %s3356_s24   ;;  %s2684_s15 = sphi %s2838_s15, %s3355_s15  }
  0x31   : > { %3319 = sst [smem:[#allocation16_spill]] %s2692_s4  ;;  %s2233_s26 = sadd.s32 4294967294, %s2704_s16  }
  0x32   : > { %3320 = sst [smem:[#allocation17_spill]] %s2700_s5  ;;  %s63_s27 = sadd.s32 1, %s2700_s5 }
  0x33   : > { %3321 = sst [smem:[#allocation18_spill]] %s2704_s16  ;;  %s536_s28 = sadd.s32 1, %s2692_s4 }
  0x34   : > { %p65_p1 = scmp.ge.s32.totalorder %s63_s27, 2  ;;  %p546_p2 = scmp.ne.s32.totalorder %s2692_s4, %s2688_s24 }
  0x35   : > { %p547_p3 = scmp.eq.s32.totalorder %s2232_s17, 1  ;;  %p552_p4 = scmp.ne.s32.totalorder %s2688_s24, %s2684_s15 }
  0x36   : > { %s3358_s27 = smov (%p65_p1, %s63_s27), 0  ;;  %p553_p6 = scmp.eq.s32.totalorder %s2233_s26, 1 }
  0x37   : > { %3322 = sst [smem:[#allocation19_spill]] %s3358_s27  ;;  %p2878_p5 = por %p547_p3, %p546_p2 }
  0x38   : > { %s533_s6 = ssub.s32 %s2700_s5, %s3358_s27  ;;  %p2244_p7 = scmp.ge.s32.totalorder %s2704_s16, 1 }
  0x39   : > { %s3323_s1 = scalar_select %p2878_p5, 1, 0 }
  0x3a   : > { %p534_p8 = scmp.eq.s32.totalorder %s533_s6, 0  ;;  %p2885_p9 = por %p553_p6, %p552_p4 }
  0x3b   : > { %3324 = sst [smem:[#allocation20_spill]] %s3323_s1  ;;  %p713_p10 = scmp.lt.s32.totalorder %s2704_s16, 3 }
  0x3c   : > { %s3325_s29 = scalar_select %p2885_p9, 1, 0 }
  0x3d   : > { %s2891_s30 = scalar_select %p534_p8, %s2692_s4, %s536_s28  }
  0x3e   : > { %3326 = sst [smem:[#allocation21_spill]] %s3325_s29  ;;  %p714_p11 = pnand %p2244_p7, %p713_p10 }
  0x3f   : > { %3327 = sst [smem:[#allocation22_spill]] %s2891_s30  ;;  %s2245_s21 = sshll.u32 (!%p714_p11), %s2696_s25, 7  ;;  %vm936_vm0 = vcmask (!%p714_p11), 261120   ;;  %v2709_v0 = vmov (!%p714_p11), 0.0   ;;  %v2514_v1 = vld [vmem:[%s3284_s9] sm:$0xff] (!%p714_p11)   ;;  %v2516_v6 = vld [vmem:[%s3284_s9 + $0x8] sm:$0xff] (!%p714_p11)  }
  0x40   : > { %717 = sbr.rel (%p714_p11) target bundleno = 1404 (0x57c), region = 80  ;;  %s834_s14 = sld [smem:[#allocation5 + %s2245_s21]] (!%p714_p11)  ;;  %937 = vst.msk [vmem:[#allocation2] sm:$0xff] (!%p714_p11), %vm936_vm0, %v2709_v0  ;;  %v2515_v2 = vld [vmem:[%s3284_s9 + $0x20] sm:$0xff] (!%p714_p11)   ;;  %2375 = vmatprep.mubr.msk.bf16.mxu0 (!%p714_p11), %vm936_vm0, %v2514_v1  ;;  %v2517_v7 = vld [vmem:[%s3284_s9 + $0x28] sm:$0xff] (!%p714_p11)   ;;  %v2518_v8 = vld [vmem:[%s3284_s9 + $0x10] sm:$0xff] (!%p714_p11)  }
  0x41   : > { %s856_s17 = sld [smem:[#allocation5 + %s2245_s21]] (!%p714_p11)  ;;  %p912_p12 = scmp.lt.s32.totalorder (!%p714_p11), %s2696_s25, 1  ;;  %2383 = vmatprep.mubr.msk.bf16.mxu1 (!%p714_p11), %vm936_vm0, %v2515_v2  ;;  %v2519_v9 = vld [vmem:[%s3284_s9 + $0x30] sm:$0xff] (!%p714_p11)   ;;  %v2520_v10 = vld [vmem:[%s3284_s9 + $0x18] sm:$0xff] (!%p714_p11)   ;;  %vm1120_vm1 = vcmask (!%p714_p11), 64512  }
  0x42   : > { %s877_s26 = sld [smem:[#allocation5 + %s2245_s21]] (!%p714_p11)  ;;  %v2521_v11 = vld [vmem:[%s3284_s9 + $0x38] sm:$0xff] (!%p714_p11)   ;;  %s3332_s5 = sand.u32 (!%p714_p11), 1, %s2688_s24  }
  0x43   : > { %s898_s6 = sld [smem:[#allocation5 + %s2245_s21]] (!%p714_p11) }
  0x44   : > { %s3328_s30 = sld [smem:[#allocation24_spill]] (!%p714_p11) }
  0x45   : > { %s2986_s15 = sld [smem:[#allocation6 + %s2696_s25]] (!%p714_p11) }
  0x46   : > { %s2246_s0 = sshll.u32 (!%p714_p11), %s834_s14, 5 }
  0x47   : > { %s2907_s28 = scalar_select %p912_p12, %s2696_s25, 1 }
  0x48   : > { %p836_p13 = scmp.lt.s32.totalorder %s2246_s0, 63  ;;  %s2249_s3 = sshll.u32 %s856_s17, 1 }
  0x49   : > { %s2254_s27 = sshll.u32 %s2907_s28, 3  ;;  %p858_p0 = scmp.lt.s32.totalorder %s2249_s3, 3 }
  0x4a   : > { %s2251_s22 = sshll.u32 %s877_s26, 1  ;;  %s3360_s0 = smov (!%p836_p13, %s2246_s0), 63 }
  0x4b   : > { %s3362_s3 = smov (!%p858_p0, %s2249_s3), 3  ;;  %s2247_s23 = sshll.u32 %s3360_s0, 2 }
  0x4c   : > { %p879_p1 = scmp.lt.s32.totalorder %s2251_s22, 3  ;;  %s2915_s4 = scalar_lea.vmem %s3328_s30, %s2247_s23 }
  0x4d   : > { %s2253_s17 = sshll.u32 %s898_s6, 1  ;;  %s2926_s20 = scalar_lea.vmem %s3282_s7, %s2254_s27 }
  0x4e   : > { %s3364_s22 = smov (!%p879_p1, %s2251_s22), 3  ;;  %p900_p2 = scmp.lt.s32.totalorder %s2253_s17, 3  ;;  %v954_v3 = vld [vmem:[%s2926_s20] sm:$0xff] }
  0x4f   : > { %s2336_s30 = sshll.u32 %s2907_s28, 4  ;;  %v955_v4 = vpack.c.bf16 %v954_v3, %v954_v3  ;;  %s2948_s13 = scalar_lea.vmem %s3290_s18, %s2254_s27 }
  0x50   : > { %s3366_s17 = smov (!%p900_p2, %s2253_s17), 3  ;;  %s2943_s16 = scalar_lea.vmem %s3283_s8, %s2336_s30 }
  0x51   : > { %2441 = vmatprep.subr.msk.bf16.mxu0 %vm936_vm0, %v955_v4  ;;  %2442 = vmatprep.subr.msk.bf16.mxu1 %vm936_vm0, %v955_v4  ;;  %v1021_v5 = vsel %vm936_vm0, %v955_v4, 0  ;;  %s3331_s23 = sld [smem:[#allocation27_spill]]  ;;  %s930_s30 = scalar_lea.vmem %s3291_s19, %s2907_s28 }
  0x52   : > { %2374 = vmatpush3.bf16.xpose.msra.mxu0 %v1021_v5  ;;  %2408 = vmatpush3.bf16.xpose.msra.mxu1 %v1021_v5  ;;  %s3006_s27 = scalar_lea.vmem [#allocation11], %s3332_s5  ;;  %p2275_p3 = scmp.le.s32.totalorder %s2986_s15, 0 }
  0x53   : > { %v2522_v28 = vld [vmem:[%s2915_s4 + $0x40] sm:$0xff] (!%p2275_p3)   ;;  %vm1438_vm2 = vcmask (!%p2275_p3), 269312   ;;  %v1183_v29 = vlaneseq (!%p2275_p3)  ;;  %s2276_s14 = sshll.u32 (!%p2275_p3), %s2696_s25, 3  ;;  %v2524_v31 = vld [vmem:[%s2915_s4 + $0x48] sm:$0xff] (!%p2275_p3)   ;;  %s3333_s0 = sld [smem:[#allocation26_spill]] (!%p2275_p3)  ;;  %v2526_v41 = vld [vmem:[%s2915_s4 + $0x50] sm:$0xff] (!%p2275_p3)  }
  0x54   : > { %v2523_v30 = vld [vmem:[%s2915_s4] sm:$0xff] (!%p2275_p3)   ;;  %2443 = vmatprep.subr.msk.bf16.mxu0 (!%p2275_p3), %vm1438_vm2, %v2522_v28  ;;  %v1185_v34 = vstv (!%p2275_p3), %s2276_s14  ;;  %v2525_v35 = vld [vmem:[%s2915_s4 + $0x8] sm:$0xff] (!%p2275_p3)   ;;  %v2710_v44 = vmov (!%p2275_p3), 0   ;;  %v2527_v45 = vld [vmem:[%s2915_s4 + $0x10] sm:$0xff] (!%p2275_p3)   ;;  %v2711_v46 = vmov (!%p2275_p3), 0.0   ;;  %vm1258_vm4 = vcmask (!%p2275_p3), 1043456  }
  0x55   : > { %v1184_v32 = vshrl.u32 (!%p2275_p3), %v1183_v29, 7  ;;  %v1452_v33 = vsel (!%p2275_p3), %vm1438_vm2, %v2523_v30, 0  ;;  %v1455_v40 = vsel (!%p2275_p3), %vm1438_vm2, %v2525_v35, 0  ;;  %v1458_v55 = vsel (!%p2275_p3), %vm1438_vm2, %v2527_v45, 0  ;;  %v2528_v56 = vld [vmem:[%s2915_s4 + $0x58] sm:$0xff] (!%p2275_p3)   ;;  %v2538_v63 = vld [vmem:[%s3285_s10] sm:$0xff] (!%p2275_p3)  }
  0x56   : > { %v2529_v60 = vld [vmem:[%s2915_s4 + $0x18] sm:$0xff] (!%p2275_p3)  }
  0x57   : > { %s902_s29 = scalar_lea.vmem %s3331_s23, %s3366_s17  ;;  %v3017_v36 = vsub.s32 (!%p2275_p3), 1, %v1184_v32  ;;  %v1186_v37 = vadd.s32 (!%p2275_p3), %v1185_v34, %v1184_v32  ;;  %v3024_v39 = vsub.s32 (!%p2275_p3), 0, %v1184_v32  ;;  %v2536_v28 = vld [vmem:[%s2915_s4 + $0x78] sm:$0xff] (!%p2275_p3)  }
  0x58   : > { %v1204_v57 = vld [vmem:[%s902_s29] sm:$0x3] (!%p2275_p3)  ;;  %v2537_v29 = vld [vmem:[%s2915_s4 + $0x38] sm:$0xff] (!%p2275_p3)  }
  0x59   : > { %2376 = vmatmul.mubr.msk.bf16.vlgmr.msra.gmra.mrb[0].mxu0 %vm936_vm0, %v2516_v6  ;;  %2384 = vmatmul.mubr.msk.bf16.vlgmr.msra.gmra.mrb[0].mxu1 %vm936_vm0, %v2517_v7  ;;  %s3334_s2 = scalar_lea.vmem (!%p2275_p3), %s3333_s0, %s3364_s22  ;;  %v1212_v58 = vrot.slane (!%p2275_p3), %v1204_v57, %v3017_v36  ;;  %v1208_v59 = vrot.slane (!%p2275_p3), %v1204_v57, %v3024_v39  ;;  %v2541_v45 = vld [vmem:[%s3285_s10 + $0x18] sm:$0xff] (!%p2275_p3)  }
  0x5a   : > { %2379 = vmatprep.mubr.msk.bf16.mxu0 %vm936_vm0, %v2518_v8  ;;  %2387 = vmatprep.mubr.msk.bf16.mxu1 %vm936_vm0, %v2519_v9  ;;  %v1187_v38 = vld [vmem:[%s3334_s2] sm:$0x3] (!%p2275_p3)  ;;  %v1461_v9 = vsel (!%p2275_p3), %vm1438_vm2, %v2529_v60, 0  ;;  %s3340_s2 = sld [smem:[#allocation25_spill]] (!%p2275_p3) }
  0x5b   : > { %2347 = vmatpush3.bf16.xpose.msra.mxu0 (!%p2275_p3), %v1452_v33  ;;  %v1195_v42 = vrot.slane (!%p2275_p3), %v1187_v38, %v3017_v36  ;;  %v1191_v43 = vrot.slane (!%p2275_p3), %v1187_v38, %v3024_v39  ;;  %vm3046_vm6 = vcmp.eq.s32.totalorder (!%p2275_p3), %v1212_v58, %v1186_v37  ;;  %vm3050_vm7 = vcmp.eq.s32.totalorder (!%p2275_p3), %v1208_v59, %v1186_v37 }
  0x5c   : > { %2444 = vmatprep.subr.msk.bf16.mxu0 (!%p2275_p3), %vm1438_vm2, %v2524_v31  ;;  %v2280_v3 = vsel (!%p2275_p3), %vm3046_vm6, 1.0, %v2711_v46  ;;  %v2279_v4 = vsel (!%p2275_p3), %vm3050_vm7, 1.0, %v2711_v46  ;;  %v1473_v33 = vsel (!%p2275_p3), %vm1438_vm2, %v2537_v29, 0  ;;  %vm2323_vm8 = vmpackc.low (!%p2275_p3), %vm3046_vm6, %vm3046_vm6 }
  0x5d   : > { %vm1197_vm3 = vcmp.eq.s32.totalorder (!%p2275_p3), %v1195_v42, %v1186_v37  ;;  %vm1196_vm5 = vcmp.eq.s32.totalorder (!%p2275_p3), %v1191_v43, %v1186_v37  ;;  %v1220_v5 = vpack.c.bf16 (!%p2275_p3), %v2280_v3, %v2280_v3  ;;  %v1219_v6 = vpack.c.bf16 (!%p2275_p3), %v2279_v4, %v2279_v4  ;;  %v2539_v37 = vld [vmem:[%s3285_s10 + $0x8] sm:$0xff] (!%p2275_p3)   ;;  %v2540_v42 = vld [vmem:[%s3285_s10 + $0x10] sm:$0xff] (!%p2275_p3)   ;;  %vm2325_vm9 = vmpackc.low (!%p2275_p3), %vm3050_vm7, %vm3050_vm7 }
  0x5e   : > { %v2278_v47 = vsel (!%p2275_p3), %vm1197_vm3, 1.0, %v2711_v46  ;;  %v2277_v49 = vsel (!%p2275_p3), %vm1196_vm5, 1.0, %v2711_v46 }
  0x5f   : > { %v1203_v48 = vpack.c.bf16 (!%p2275_p3), %v2278_v47, %v2278_v47  ;;  %v1202_v52 = vpack.c.bf16 (!%p2275_p3), %v2277_v49, %v2277_v49  ;;  %v1585_v8 = vsel (!%p2275_p3), %vm1258_vm4, %v1219_v6, 0 }
  0x60   : > { %s3341_s22 = scalar_lea.vmem (!%p2275_p3), %s3340_s2, %s3362_s3  ;;  %s1738_s3 = sld [smem:[#allocation9]] (!%p2275_p3) }
  0x61   : > { %2380 = vmatmul.mubr.msk.bf16.gmra.mrb[4].mxu0 %vm936_vm0, %v2520_v10  ;;  %2388 = vmatmul.mubr.msk.bf16.gmra.mrb[4].mxu1 %vm936_vm0, %v2521_v11  ;;  %v1260_v53 = vsel (!%p2275_p3), %vm1258_vm4, %v1202_v52, 0  ;;  %v2530_v10 = vld [vmem:[%s2915_s4 + $0x60] sm:$0xff] (!%p2275_p3)  }
  0x62   : > { %1297 = vmatprep.mubr.bf16.mxu1 (!%p2275_p3), %v2710_v44  ;;  %2281 = vmatprep.subr.msk.bf16.mxu1 (!%p2275_p3), %vm1258_vm4, %v1203_v48  ;;  %v2531_v11 = vld [vmem:[%s2915_s4 + $0x20] sm:$0xff] (!%p2275_p3)  }
  0x63   : > { %2349 = vmatpush3.bf16.xpose.msra.mxu0 (!%p2275_p3), %v1455_v40  ;;  %1266 = vmatpush1.bf16.msra.mxu1 (!%p2275_p3), %v1260_v53 }
  0x64   : > { %2445 = vmatprep.subr.msk.bf16.mxu0 (!%p2275_p3), %vm1438_vm2, %v2526_v41  ;;  %2362 = vmatprep.mubr.msk.bf16.mxu0 (!%p2275_p3), %vm1438_vm2, %v2538_v63 }
  0x65   : > { %2310 = vmatprep.subr.msk.bf16.mxu1 (!%p2275_p3), %vm1258_vm4, %v1220_v5 }
  0x6b   : > { %2351 = vmatpush3.bf16.xpose.msra.mxu0 (!%p2275_p3), %v1458_v55 }
  0x6c   : > { %2446 = vmatprep.subr.msk.bf16.mxu0 (!%p2275_p3), %vm1438_vm2, %v2528_v56 }
  0x73   : > { %2353 = vmatpush3.bf16.xpose.msra.mxu0 (!%p2275_p3), %v1461_v9 }
  0x74   : > { %2447 = vmatprep.subr.msk.bf16.mxu0 (!%p2275_p3), %vm1438_vm2, %v2530_v10 }
 0x12c   : > { %v2377_v12 = vpop.f32.mrb[0].mxu0  ;;  %v2385_v13 = vpop.f32.mrb[0].mxu1 }
 0x12d   : > { %1123 = vst.msk [vmem:[#allocation3 + $0x10] sm:$0xff] %vm1120_vm1, %v2377_v12  ;;  %1131 = vst.msk [vmem:[#allocation3 + $0x50] sm:$0xff] %vm1120_vm1, %v2385_v13  ;;  %v1057_v14 = vpop.f32.mrb[1].mxu0  ;;  %v1089_v15 = vpop.f32.mrb[1].mxu1 }
 0x12e   : > { %1121 = vst.msk [vmem:[#allocation3] sm:$0xff] %vm1120_vm1, %v1057_v14  ;;  %1129 = vst.msk [vmem:[#allocation3 + $0x40] sm:$0xff] %vm1120_vm1, %v1089_v15  ;;  %v2378_v16 = vpop.f32.mrb[2].mxu0  ;;  %v2386_v17 = vpop.f32.mrb[2].mxu1  ;;  %v1464_v15 = vsel (!%p2275_p3), %vm1438_vm2, %v2531_v11, 0 }
 0x12f   : > { %1124 = vst.msk [vmem:[#allocation3 + $0x18] sm:$0xff] %vm1120_vm1, %v2378_v16  ;;  %1132 = vst.msk [vmem:[#allocation3 + $0x58] sm:$0xff] %vm1120_vm1, %v2386_v17  ;;  %v1060_v18 = vpop.f32.mrb[3].mxu0  ;;  %v1092_v19 = vpop.f32.mrb[3].mxu1  ;;  %v2532_v16 = vld [vmem:[%s2915_s4 + $0x68] sm:$0xff] (!%p2275_p3)   ;;  %2355 = vmatpush3.bf16.xpose.msra.mxu0 (!%p2275_p3), %v1464_v15 }
 0x130   : > { %1122 = vst.msk [vmem:[#allocation3 + $0x8] sm:$0xff] %vm1120_vm1, %v1060_v18  ;;  %1130 = vst.msk [vmem:[#allocation3 + $0x48] sm:$0xff] %vm1120_vm1, %v1092_v19  ;;  %2448 = vmatprep.subr.msk.bf16.mxu0 (!%p2275_p3), %vm1438_vm2, %v2532_v16  ;;  %v2533_v17 = vld [vmem:[%s2915_s4 + $0x28] sm:$0xff] (!%p2275_p3)  }
 0x132   : > { %1141 = sbr.rel (%p2275_p3) target bundleno = 842 (0x34a), region = 88 }
 0x134   : > { %v2381_v20 = vpop.f32.mrb[4].mxu0  ;;  %v2389_v21 = vpop.f32.mrb[4].mxu1  ;;  %v1223_v1 = vld [vmem:[#allocation3 + $0x10] sm:$0xff] (!%p2275_p3) }
 0x135   : > { %1127 = vst.msk [vmem:[#allocation3 + $0x30] sm:$0xff] %vm1120_vm1, %v2381_v20  ;;  %1135 = vst.msk [vmem:[#allocation3 + $0x70] sm:$0xff] %vm1120_vm1, %v2389_v21  ;;  %v1073_v22 = vpop.f32.mrb[5].mxu0  ;;  %v1105_v23 = vpop.f32.mrb[5].mxu1  ;;  %v1221_v50 = vld [vmem:[#allocation3] sm:$0xff] (!%p2275_p3)  ;;  %v1467_v21 = vsel (!%p2275_p3), %vm1438_vm2, %v2533_v17, 0 }
 0x136   : > { %1125 = vst.msk [vmem:[#allocation3 + $0x20] sm:$0xff] %vm1120_vm1, %v1073_v22  ;;  %1133 = vst.msk [vmem:[#allocation3 + $0x60] sm:$0xff] %vm1120_vm1, %v1105_v23  ;;  %v2382_v24 = vpop.f32.mrb[6].mxu0  ;;  %v2390_v25 = vpop.f32.mrb[6].mxu1  ;;  %v1224_v2 = vld [vmem:[#allocation3 + $0x18] sm:$0xff] (!%p2275_p3)  ;;  %v2534_v22 = vld [vmem:[%s2915_s4 + $0x70] sm:$0xff] (!%p2275_p3)  }
 0x137   : > { %1128 = vst.msk [vmem:[#allocation3 + $0x38] sm:$0xff] %vm1120_vm1, %v2382_v24  ;;  %1136 = vst.msk [vmem:[#allocation3 + $0x78] sm:$0xff] %vm1120_vm1, %v2390_v25  ;;  %v1076_v26 = vpop.f32.mrb[7].mxu0  ;;  %v1108_v27 = vpop.f32.mrb[7].mxu1  ;;  %v1222_v51 = vld [vmem:[#allocation3 + $0x8] sm:$0xff] (!%p2275_p3)  ;;  %v1238_v7 = vpack.c.bf16 (!%p2275_p3), %v1224_v2, %v1223_v1  ;;  %2357 = vmatpush3.bf16.xpose.msra.mxu0 (!%p2275_p3), %v1467_v21  ;;  %v1229_v24 = vld [vmem:[#allocation3 + $0x40] sm:$0xff] (!%p2275_p3) }
 0x138   : > { %1126 = vst.msk [vmem:[#allocation3 + $0x28] sm:$0xff] %vm1120_vm1, %v1076_v26  ;;  %1134 = vst.msk [vmem:[#allocation3 + $0x68] sm:$0xff] %vm1120_vm1, %v1108_v27  ;;  %v1237_v54 = vpack.c.bf16 (!%p2275_p3), %v1222_v51, %v1221_v50  ;;  %2449 = vmatprep.subr.msk.bf16.mxu0 (!%p2275_p3), %vm1438_vm2, %v2534_v22  ;;  %v2535_v23 = vld [vmem:[%s2915_s4 + $0x30] sm:$0xff] (!%p2275_p3)   ;;  %v1231_v30 = vld [vmem:[#allocation3 + $0x50] sm:$0xff] (!%p2275_p3) }
 0x139   : > { %v1230_v25 = vld [vmem:[#allocation3 + $0x48] sm:$0xff]  ;;  %v1470_v27 = vsel %vm1438_vm2, %v2535_v23, 0  ;;  %v1232_v31 = vld [vmem:[#allocation3 + $0x58] sm:$0xff] }
 0x13a   : > { %2282 = vmatmul.mubr.msk.bf16.vlgmr.msra.gmra.mrb[0].mxu1 %vm1120_vm1, %v1237_v54  ;;  %v1241_v26 = vpack.c.bf16 %v1230_v25, %v1229_v24  ;;  %v1242_v32 = vpack.c.bf16 %v1232_v31, %v1231_v30 }
 0x13b   : > { %1307 = vmatprep.mubr.bf16.mxu1 %v2710_v44  ;;  %1591 = vmatpush1.bf16.msra.mxu1 %v1585_v8 }
 0x13c   : > { %v1227_v18 = vld [vmem:[#allocation3 + $0x30] sm:$0xff] }
 0x13d   : > { %v1225_v12 = vld [vmem:[#allocation3 + $0x20] sm:$0xff]  ;;  %v1235_v40 = vld [vmem:[#allocation3 + $0x70] sm:$0xff] }
 0x13e   : > { %v1228_v19 = vld [vmem:[#allocation3 + $0x38] sm:$0xff]  ;;  %v1233_v34 = vld [vmem:[#allocation3 + $0x60] sm:$0xff] }
 0x13f   : > { %v1226_v13 = vld [vmem:[#allocation3 + $0x28] sm:$0xff]  ;;  %v1240_v20 = vpack.c.bf16 %v1228_v19, %v1227_v18  ;;  %2359 = vmatpush3.bf16.xpose.msra.mxu0 %v1470_v27  ;;  %v1236_v41 = vld [vmem:[#allocation3 + $0x78] sm:$0xff] }
 0x140   : > { %v1239_v14 = vpack.c.bf16 %v1226_v13, %v1225_v12  ;;  %2450 = vmatprep.subr.msk.bf16.mxu0 %vm1438_vm2, %v2536_v28  ;;  %v1234_v35 = vld [vmem:[#allocation3 + $0x68] sm:$0xff]  ;;  %v1244_v43 = vpack.c.bf16 %v1236_v41, %v1235_v40  ;;  %v1735_v12 = vld [vmem:[%s3341_s22] sm:$0x3] }
 0x141   : > { %v1243_v38 = vpack.c.bf16 %v1234_v35, %v1233_v34  ;;  %2542 = vlog2.f32 %v1735_v12 }
 0x142   : > { %2283 = vmatmul.mubr.msk.bf16.gmra.mrb[4].mxu1 %vm1120_vm1, %v1238_v7 }
 0x143   : > { %1317 = vmatprep.mubr.bf16.mxu1 %v2710_v44 }
 0x147   : > { %2361 = vmatpush3.bf16.xpose.msra.mxu0 %v1473_v33 }
 0x14a   : > { %2284 = vmatmul.mubr.msk.bf16.gmra.mrb[8].mxu1 %vm1120_vm1, %v1239_v14 }
 0x14b   : > { %1327 = vmatprep.mubr.bf16.mxu1 %v2710_v44 }
 0x14e   : > { %2363 = vmatmul.mubr.msk.bf16.vlgmr.msra.gmra.mrb[0].mxu0 %vm1438_vm2, %v2538_v63 }
 0x14f   : > { %2364 = vmatprep.mubr.msk.bf16.mxu0 %vm1438_vm2, %v2539_v37 }
 0x152   : > { %2285 = vmatmul.mubr.msk.bf16.gmra.mrb[12].mxu1 %vm1120_vm1, %v1240_v20 }
 0x153   : > { %1622 = vmatprep.mubr.bf16.mxu1 %v2710_v44 }
 0x156   : > { %2365 = vmatmul.mubr.msk.bf16.gmra.mrb[4].mxu0 %vm1438_vm2, %v2539_v37 }
 0x157   : > { %2366 = vmatprep.mubr.msk.bf16.mxu0 %vm1438_vm2, %v2540_v42 }
 0x15a   : > { %2311 = vmatmul.mubr.msk.bf16.vlgmr.msra.gmra.mrb[16].mxu1 %vm1120_vm1, %v1241_v26 }
 0x15b   : > { %1632 = vmatprep.mubr.bf16.mxu1 %v2710_v44 }
 0x15e   : > { %2367 = vmatmul.mubr.msk.bf16.gmra.mrb[8].mxu0 %vm1438_vm2, %v2540_v42 }
 0x15f   : > { %2368 = vmatprep.mubr.msk.bf16.mxu0 %vm1438_vm2, %v2541_v45 }
 0x162   : > { %2312 = vmatmul.mubr.msk.bf16.gmra.mrb[20].mxu1 %vm1120_vm1, %v1242_v32 }
 0x163   : > { %1642 = vmatprep.mubr.bf16.mxu1 %v2710_v44 }
 0x166   : > { %2369 = vmatmul.mubr.msk.bf16.gmra.mrb[12].mxu0 %vm1438_vm2, %v2541_v45 }
 0x16a   : > { %2313 = vmatmul.mubr.msk.bf16.gmra.mrb[24].mxu1 %vm1120_vm1, %v1243_v38 }
 0x16b   : > { %1652 = vmatprep.mubr.bf16.mxu1 %v2710_v44  ;;  %v2712_v44 = vmov 1.0|1.0  }
 0x172   : > { %2314 = vmatmul.mubr.msk.bf16.gmra.mrb[28].mxu1 %vm1120_vm1, %v1244_v43  ;;  %v2543_v43 = vpop.eup %2542 }
 0x173   : > { %2324 = vmatprep.mubr.msk.bf16.mxu1 %vm2323_vm8, %v2712_v44 }
 0x20d   : > { %v1299_v46 = vpop.f32.mrb[0].mxu1 }
 0x20e   : > { %v1301_v47 = vpop.f32.mrb[1].mxu1 }
 0x20f   : > { %v1303_v48 = vpop.f32.mrb[2].mxu1 }
 0x210   : > { %v1305_v49 = vpop.f32.mrb[3].mxu1 }
 0x215   : > { %v1309_v50 = vpop.f32.mrb[4].mxu1 }
 0x216   : > { %v1311_v51 = vpop.f32.mrb[5].mxu1 }
 0x217   : > { %v1313_v52 = vpop.f32.mrb[6].mxu1 }
 0x218   : > { %v1315_v53 = vpop.f32.mrb[7].mxu1 }
 0x21d   : > { %v1319_v54 = vpop.f32.mrb[8].mxu1 }
 0x21e   : > { %v1321_v55 = vpop.f32.mrb[9].mxu1 }
 0x21f   : > { %v1323_v56 = vpop.f32.mrb[10].mxu1 }
 0x220   : > { %v1325_v57 = vpop.f32.mrb[11].mxu1 }
 0x221   : > { %v1533_v8 = vpop.f32.mrb[0].mxu0 }
 0x222   : > { %v1534_v9 = vadd.f32 %v1533_v8, %v1299_v46  ;;  %v1535_v10 = vpop.f32.mrb[1].mxu0 }
 0x223   : > { %v1536_v13 = vadd.f32 %v1535_v10, %v1301_v47  ;;  %v1537_v14 = vpop.f32.mrb[2].mxu0 }
 0x224   : > { %v1538_v17 = vadd.f32 %v1537_v14, %v1303_v48  ;;  %v1539_v18 = vpop.f32.mrb[3].mxu0  ;;  %v1737_v48 = vmul.f32 0.6931472, %v2543_v43 }
 0x225   : > { %v3116_v58 = vpop.f32.mrb[12].mxu1  ;;  %v1540_v21 = vadd.f32 %v1539_v18, %v1305_v49 }
 0x226   : > { %v3118_v59 = vpop.f32.mrb[13].mxu1 }
 0x227   : > { %v3120_v60 = vpop.f32.mrb[14].mxu1 }
 0x228   : > { %v3122_v61 = vpop.f32.mrb[15].mxu1 }
 0x229   : > { %v1543_v25 = vpop.f32.mrb[4].mxu0 }
 0x22a   : > { %v1544_v26 = vadd.f32 %v1543_v25, %v1309_v50  ;;  %v1545_v27 = vpop.f32.mrb[5].mxu0 }
 0x22b   : > { %v1546_v29 = vadd.f32 %v1545_v27, %v1311_v51  ;;  %v1547_v30 = vpop.f32.mrb[6].mxu0  ;;  %v1739_v51 = vstv %s1738_s3 }
 0x22c   : > { %v1548_v33 = vadd.f32 %v1547_v30, %v1313_v52  ;;  %v1549_v34 = vpop.f32.mrb[7].mxu0 }
 0x22d   : > { %v1624_v63 = vpop.f32.mrb[16].mxu1  ;;  %v1550_v38 = vadd.f32 %v1549_v34, %v1315_v53 }
 0x22e   : > { %v1626_v1 = vpop.f32.mrb[17].mxu1  ;;  %v3129_v16 = vadd.f32 %v1624_v63, %v1534_v9 }
 0x22f   : > { %v1628_v2 = vpop.f32.mrb[18].mxu1  ;;  %v3131_v20 = vadd.f32 %v1626_v1, %v1536_v13 }
 0x230   : > { %v1630_v3 = vpop.f32.mrb[19].mxu1  ;;  %v3133_v23 = vadd.f32 %v1628_v2, %v1538_v17 }
 0x231   : > { %v3135_v24 = vadd.f32 %v1630_v3, %v1540_v21  ;;  %v1553_v45 = vpop.f32.mrb[8].mxu0 }
 0x232   : > { %v1554_v46 = vadd.f32 %v1553_v45, %v1319_v54  ;;  %v1555_v47 = vpop.f32.mrb[9].mxu0 }
 0x233   : > { %v1556_v49 = vadd.f32 %v1555_v47, %v1321_v55  ;;  %v1557_v50 = vpop.f32.mrb[10].mxu0 }
 0x234   : > { %v1558_v52 = vadd.f32 %v1557_v50, %v1323_v56  ;;  %v1559_v1 = vpop.f32.mrb[11].mxu0 }
 0x235   : > { %v1634_v4 = vpop.f32.mrb[20].mxu1  ;;  %v1560_v3 = vadd.f32 %v1559_v1, %v1325_v57 }
 0x236   : > { %v1636_v5 = vpop.f32.mrb[21].mxu1  ;;  %v3137_v32 = vadd.f32 %v1634_v4, %v1544_v26 }
 0x237   : > { %v1638_v6 = vpop.f32.mrb[22].mxu1  ;;  %v3139_v37 = vadd.f32 %v1636_v5, %v1546_v29  ;;  %v1740_v5 = vmul.f32 %v1739_v51, %v1737_v48 }
 0x238   : > { %v1640_v7 = vpop.f32.mrb[23].mxu1  ;;  %v3141_v41 = vadd.f32 %v1638_v6, %v1548_v33 }
 0x239   : > { %v3143_v42 = vadd.f32 %v1640_v7, %v1550_v38  ;;  %v1563_v54 = vpop.f32.mrb[12].mxu0  ;;  %v1741_v12 = vmul.f32 1.442695, %v1740_v5 }
 0x23a   : > { %v1564_v55 = vadd.f32 %v1563_v54, %v3116_v58  ;;  %v1565_v10 = vpop.f32.mrb[13].mxu0 }
 0x23b   : > { %v1566_v56 = vadd.f32 %v1565_v10, %v3118_v59 }
 0x23d   : > { %v1644_v11 = vpop.f32.mrb[24].mxu1 }
 0x23e   : > { %v1646_v15 = vpop.f32.mrb[25].mxu1  ;;  %v1671_v63 = vadd.f32 %v1644_v11, %v1554_v46  ;;  %v1567_v11 = vpop.f32.mrb[14].mxu0 }
 0x23f   : > { %v1648_v19 = vpop.f32.mrb[26].mxu1  ;;  %v1672_v2 = vadd.f32 %v1646_v15, %v1556_v49  ;;  %v1568_v57 = vadd.f32 %v1567_v11, %v3120_v60  ;;  %v1569_v14 = vpop.f32.mrb[15].mxu0 }
 0x240   : > { %v1650_v22 = vpop.f32.mrb[27].mxu1  ;;  %v2315_v4 = vmul.f32 -1.442695, %v1671_v63  ;;  %v1673_v53 = vadd.f32 %v1648_v19, %v1558_v52  ;;  %v1570_v15 = vadd.f32 %v1569_v14, %v3122_v61 }
 0x241   : > { %v2316_v6 = vmul.f32 -1.442695, %v1672_v2  ;;  %v1674_v8 = vadd.f32 %v1650_v22, %v1560_v3 }
 0x242   : > { %2544 = vpow2.f32 %v2315_v4  ;;  %v2317_v7 = vmul.f32 -1.442695, %v1673_v53 }
 0x243   : > { %2546 = vpow2.f32 %v2316_v6  ;;  %v2318_v9 = vmul.f32 -1.442695, %v1674_v8 }
 0x244   : > { %2548 = vpow2.f32 %v2317_v7 }
 0x245   : > { %v1654_v28 = vpop.f32.mrb[28].mxu1  ;;  %2550 = vpow2.f32 %v2318_v9 }
 0x246   : > { %v1656_v31 = vpop.f32.mrb[29].mxu1  ;;  %v1675_v13 = vadd.f32 %v1654_v28, %v1564_v55  ;;  %2552 = vpow2.f32 %v1741_v12 }
 0x247   : > { %v1658_v35 = vpop.f32.mrb[30].mxu1  ;;  %v1676_v17 = vadd.f32 %v1656_v31, %v1566_v56 }
 0x248   : > { %v1660_v40 = vpop.f32.mrb[31].mxu1  ;;  %v2319_v18 = vmul.f32 -1.442695, %v1675_v13  ;;  %v1677_v19 = vadd.f32 %v1658_v35, %v1568_v57 }
 0x249   : > { %v2320_v21 = vmul.f32 -1.442695, %v1676_v17  ;;  %v1678_v22 = vadd.f32 %v1660_v40, %v1570_v15 }
 0x24a   : > { %2554 = vpow2.f32 %v2319_v18  ;;  %v2321_v58 = vmul.f32 -1.442695, %v1677_v19 }
 0x24b   : > { %2556 = vpow2.f32 %v2320_v21  ;;  %v2322_v25 = vmul.f32 -1.442695, %v1678_v22 }
 0x24c   : > { %v2545_v26 = vpop.eup %2544  ;;  %2558 = vpow2.f32 %v2321_v58 }
 0x24d   : > { %v2547_v59 = vpop.eup %2546  ;;  %v1703_v27 = vadd.f32 1.0, %v2545_v26  ;;  %2560 = vpow2.f32 %v2322_v25 }
 0x24e   : > { %v2549_v60 = vpop.eup %2548  ;;  %v1704_v28 = vadd.f32 1.0, %v2547_v59 }
 0x24f   : > { %v2551_v29 = vpop.eup %2550  ;;  %2562 = vrcp.f32 %v1703_v27  ;;  %v1705_v61 = vadd.f32 1.0, %v2549_v60 }
 0x250   : > { %2564 = vrcp.f32 %v1704_v28  ;;  %v1706_v30 = vadd.f32 1.0, %v2551_v29  ;;  %v2553_v31 = vpop.eup %2552 }
 0x251   : > { %2566 = vrcp.f32 %v1705_v61  ;;  %v1747_v46 = vrot.slane %v2553_v31, %v3024_v39  ;;  %v1751_v49 = vrot.slane %v2553_v31, %v3017_v36 }
 0x252   : > { %2568 = vrcp.f32 %v1706_v30 }
 0x254   : > { %v2555_v33 = vpop.eup %2554 }
 0x255   : > { %v2557_v34 = vpop.eup %2556  ;;  %v1707_v35 = vadd.f32 1.0, %v2555_v33 }
 0x256   : > { %v2559_v38 = vpop.eup %2558  ;;  %v1708_v40 = vadd.f32 1.0, %v2557_v34 }
 0x257   : > { %v2561_v43 = vpop.eup %2560  ;;  %2570 = vrcp.f32 %v1707_v35  ;;  %v1709_v45 = vadd.f32 1.0, %v2559_v38 }
 0x258   : > { %2572 = vrcp.f32 %v1708_v40  ;;  %v1710_v47 = vadd.f32 1.0, %v2561_v43 }
 0x259   : > { %v2563_v48 = vpop.eup %2562  ;;  %2574 = vrcp.f32 %v1709_v45 }
 0x25a   : > { %v2565_v50 = vpop.eup %2564  ;;  %2576 = vrcp.f32 %v1710_v47  ;;  %v1727_v51 = vmul.f32 %v2563_v48, %v3129_v16 }
 0x25b   : > { %v2567_v63 = vpop.eup %2566  ;;  %v1728_v52 = vmul.f32 %v2565_v50, %v3131_v20 }
 0x25c   : > { %v2569_v1 = vpop.eup %2568  ;;  %v1729_v2 = vmul.f32 %v2567_v63, %v3133_v23  ;;  %v1754_v3 = vmul.f32 %v1747_v46, %v1727_v51 }
 0x25d   : > { %v1730_v4 = vmul.f32 %v2569_v1, %v3135_v24  ;;  %v1755_v39 = vmul.f32 %v1751_v49, %v1728_v52 }
 0x25e   : > { %v1756_v53 = vmul.f32 %v1747_v46, %v1729_v2 }
 0x25f   : > { %v1757_v5 = vmul.f32 %v1751_v49, %v1730_v4 }
 0x260   : > { %v1763_v6 = vpack.c.bf16 %v1756_v53, %v1754_v3 }
 0x261   : > { %v2571_v8 = vpop.eup %2570  ;;  %v1764_v36 = vpack.c.bf16 %v1757_v5, %v1755_v39 }
 0x262   : > { %v2573_v7 = vpop.eup %2572  ;;  %v1731_v9 = vmul.f32 %v2571_v8, %v3137_v32  ;;  %v1762_v32 = vld [vmem:[#allocation2] sm:$0xff] }
 0x263   : > { %v2575_v54 = vpop.eup %2574  ;;  %1767 = vmatprep.subr.bf16.mxu1 %v1764_v36  ;;  %v1732_v16 = vmul.f32 %v2573_v7, %v3139_v37 }
 0x264   : > { %v2577_v20 = vpop.eup %2576  ;;  %1768 = vmatpush1.bf16.xpose.msra.mxu1 %v1763_v6  ;;  %v1733_v23 = vmul.f32 %v2575_v54, %v3141_v41  ;;  %v1758_v55 = vmul.f32 %v1747_v46, %v1731_v9 }
 0x265   : > { %v1734_v24 = vmul.f32 %v2577_v20, %v3143_v42  ;;  %v1759_v10 = vmul.f32 %v1751_v49, %v1732_v16 }
 0x266   : > { %v1760_v12 = vmul.f32 %v1747_v46, %v1733_v23 }
 0x267   : > { %v1761_v56 = vmul.f32 %v1751_v49, %v1734_v24 }
 0x268   : > { %v1765_v11 = vpack.c.bf16 %v1760_v12, %v1758_v55 }
 0x269   : > { %v1766_v57 = vpack.c.bf16 %v1761_v56, %v1759_v10 }
 0x26b   : > { %1769 = vmatprep.subr.bf16.mxu1 %v1766_v57 }
 0x26c   : > { %1770 = vmatpush1.bf16.xpose.msra.mxu1 %v1765_v11 }
 0x273   : > { %2326 = vmatmul.mubr.msk.bf16.vlgmr.msra.gmra.mrb[32].mxu1 %vm2325_vm9, %v2712_v44 }
 0x346   : > { %v1801_v37 = vpop.f32.mrb[32].mxu1 }
 0x347   : > { %v1807_v13 = vadd.f32 %v1801_v37, %v1762_v32  ;;  %v1803_v41 = vpop.f32.mrb[33].mxu1 }
 0x348   : > { %v1804_v14 = vpop.f32.mrb[34].mxu1 }
 0x349   : > { %1809 = vst.msk [vmem:[#allocation2] sm:$0xff] %vm936_vm0, %v1807_v13  ;;  %v1805_v42 = vpop.f32.mrb[35].mxu1 }
 0x34a PF: > { %2391 = vmatprep.subr.bf16.mxu0 %v2709_v0  ;;  %v2578_v15 = vld [vmem:[%s2943_s16] sm:$0xff]   ;;  %2025 = vmatprep.mubr.f32.mxu1 %v2709_v0  ;;  %vm2713_vm10 = vmmov 0   ;;  %s1813_s23 = sld [smem:[#allocation8]]  ;;  %v2579_v44 = vld [vmem:[%s2943_s16 + $0x8] sm:$0xff]   ;;  %s3342_s29 = sld [smem:[#allocation28_spill]]  ;;  %v1887_v43 = vlaneseq  ;;  %vm1936_vm12 = vcmask 253952  }
 0x34b   : > { %2395 = vmatprep.mubr.msk.bf16.mxu0 %vm2713_vm10, %v2709_v0  ;;  %v1841_v62 = vsel %vm936_vm0, %v2578_v15, 0  ;;  %v1844_v17 = vsel %vm936_vm0, %v2579_v44, 0  ;;  %v1815_v18 = vld [vmem:[%s2926_s20] sm:$0xff]  ;;  %s1889_s17 = sld [smem:[#allocation7 + %s2696_s25]]  ;;  %s3343_s4 = scalar_lea.vmem %s3287_s12, %s2907_s28 }
 0x34c   : > { %2392 = vmatpush3.bf16.xpose.msra.mxu0 %v1841_v62  ;;  %v2330_v58 = vld [vmem:[%s3286_s11] ss:$0 sm:$0xff]  ;;  %v1888_v45 = vshrl.u32 %v1887_v43, 7  ;;  %s1933_s16 = sld [smem:[#allocation10]]  ;;  %s3344_s26 = sld [smem:[#allocation29_spill]] }
 0x34d   : > { %2393 = vmatprep.subr.bf16.mxu0 %v2709_v0  ;;  %v1931_v41 = vld [vmem:[%s3343_s4] sm:$0x1]  ;;  %s2066_s0 = sshll.u32 %s3006_s27, 4  ;;  %s3346_s3 = sld [smem:[#allocation30_spill]]  ;;  %s3229_s0 = int_to_ptr.vmem [resolvable:$true] %s2066_s0 }
 0x34e   : > { %v1954_v44 = vsub.s32 1, %v1888_v45 }
 0x350   : > { %s1814_s6 = sadd.f32 1.0, %s1813_s23  ;;  %v1818_v21 = vld [vmem:[#allocation2] sm:$0xff]  ;;  %v1939_v27 = vld [vmem:[%s3342_s29 + $0x8] sm:$0xff]  ;;  %v1941_v60 = vld [vmem:[%s3342_s29 + $0x18] sm:$0xff] }
 0x351   : > { %v2399_v28 = vpack.c.bf16 %v1941_v60, %v1939_v27  ;;  %v1938_v29 = vld [vmem:[%s3342_s29] sm:$0xff]  ;;  %v1940_v61 = vld [vmem:[%s3342_s29 + $0x10] sm:$0xff]  ;;  %v1943_v31 = vld [vmem:[%s3342_s29 + $0x28] sm:$0xff]  ;;  %v1890_v46 = vstv %s1889_s17  ;;  %s2624_s17 = scalar_lea.vmem %s3229_s0, 16 }
 0x352   : > { %v1816_v19 = vstv %s1814_s6  ;;  %v2401_v30 = vpack.c.bf16 %v1940_v61, %v1938_v29  ;;  %v1945_v33 = vld [vmem:[%s3342_s29 + $0x38] sm:$0xff]  ;;  %v1942_v35 = vld [vmem:[%s3342_s29 + $0x20] sm:$0xff]  ;;  %v1944_v38 = vld [vmem:[%s3342_s29 + $0x30] sm:$0xff]  ;;  %vm1891_vm11 = vcmp.lt.s32.totalorder %v1888_v45, %v1890_v46  ;;  %s3347_s6 = sand.u32 1, %s2688_s24   ;;  %p2625_p4 = scmp.ne.s32.totalorder %s3229_s0, %s2624_s17 }
 0x353   : > { %v1817_v22 = vmul.f32 %v1816_v19, %v1815_v18  ;;  %2400 = vmatprep.subr.bf16.mxu1 %v2399_v28  ;;  %v2403_v34 = vpack.c.bf16 %v1945_v33, %v1943_v31  ;;  %v2405_v40 = vpack.c.bf16 %v1944_v38, %v1942_v35  ;;  %v1934_v42 = vstv %s1933_s16  ;;  %s2048_s21 = scalar_lea.sflag [#allocation12], %s3347_s6 }
 0x354   : > { %2394 = vmatpush3.bf16.xpose.msra.mxu0 %v1844_v17  ;;  %2402 = vmatpush1.bf16.msra.mxu1 %v2401_v30  ;;  %v1946_v17 = vld [vmem:[%s3344_s26] sm:$0x3]  ;;  %p2626_p6 = pnand %p2625_p4, %p2878_p5 }
 0x355   : > { %v1819_v25 = vadd.f32 %v1818_v21, %v1817_v22  ;;  %2404 = vmatprep.subr.bf16.mxu1 %v2403_v34  ;;  %v1955_v18 = vrot.slane %v1946_v17, %v1954_v44 }
 0x356   : > { %p2627_p7 = pneg %p2626_p6 }
 0x357   : > { %1821 = vst.msk [vmem:[%s2948_s13] sm:$0xff] %vm936_vm0, %v1819_v25  ;;  %v1822_v26 = vpack.c.bf16 %v1819_v25, %v1819_v25  ;;  %v1919_v59 = vmul.f32 %v2330_v58, %v1819_v25 }
 0x358   : > { %2406 = vmatpush1.bf16.msra.mxu1 %v2405_v40 }
 0x359   : > { %v1920_v0 = vsel %vm936_vm0, %v1919_v59, 0.0  ;;  %v1950_v59 = vsub.s32 0, %v1888_v45 }
 0x35a   : > { %1921 = vadd.xlane.f32.xlu0 %v1920_v0 }
 0x35b   : > { %2396 = vmatmul.mubr.msk.bf16.vlgmr.msra.gmra.mrb[0].mxu0 %vm936_vm0, %v1822_v26  ;;  %v1951_v0 = vrot.slane %v1946_v17, %v1950_v59 }
 0x3e7   : > { %v1922_v24 = vpop.xlane.xlu0 %1921 }
 0x42e   : > { %v1880_v47 = vpop.f32.mrb[0].mxu0 }
 0x42f   : > { %v1886_v48 = vmul.f32 0.17677669, %v1880_v47  ;;  %v2397_v49 = vpop.f32.mrb[1].mxu0 }
 0x430   : > { %v1883_v50 = vpop.f32.mrb[2].mxu0 }
 0x431   : > { %v1892_v51 = vsel %vm1891_vm11, %v1886_v48, -1e+30  ;;  %v2398_v63 = vpop.f32.mrb[3].mxu0 }
 0x432   : > { %v1893_v52 = vsel %vm936_vm0, %v1892_v51, -inf }
 0x433   : > { %v1894_v1 = vrot.slane %v1893_v52, 4 }
 0x435   : > { %v1895_v2 = vmax.f32 %v1893_v52, %v1894_v1 }
 0x437   : > { %v1896_v3 = vrot.slane %v1895_v2, 2 }
 0x439   : > { %v1897_v4 = vmax.f32 %v1895_v2, %v1896_v3 }
 0x43b   : > { %v1898_v39 = vrot.slane %v1897_v4, 1 }
 0x43d   : > { %v1899_v53 = vmax.f32 %v1897_v4, %v1898_v39 }
 0x43f   : > { %v1900_v5 = vsub.f32 %v1892_v51, %v1899_v53 }
 0x441   : > { %v1901_v6 = vmul.f32 1.442695, %v1900_v5 }
 0x443   : > { %2580 = vpow2.f32 %v1901_v6 }
 0x44d   : > { %v2581_v8 = vpop.eup %2580 }
 0x44e   : > { %v1903_v36 = vsel %vm936_vm0, %v2581_v8, 0.0 }
 0x44f   : > { %v1904_v7 = vrot.slane %v1903_v36, 4 }
 0x451   : > { %v1905_v9 = vadd.f32 %v1904_v7, %v1903_v36 }
 0x453   : > { %v1906_v54 = vrot.slane %v1905_v9, 2 }
 0x455   : > { %v1907_v16 = vadd.f32 %v1906_v54, %v1905_v9 }
 0x457   : > { %v1908_v20 = vrot.slane %v1907_v16, 1 }
 0x459   : > { %v1909_v23 = vadd.f32 %v1908_v20, %v1907_v16 }
 0x45b   : > { %2582 = vrcp.f32 %v1909_v23 }
 0x465   : > { %v2583_v55 = vpop.eup %2582 }
 0x466   : > { %v1911_v10 = vmul.f32 %v2583_v55, %v2581_v8 }
 0x468   : > { %v1923_v12 = vmul.f32 %v1922_v24, %v1911_v10 }
 0x46a   : > { %v1924_v56 = vsel %vm936_vm0, %v1923_v12, 0.0 }
 0x46b   : > { %v1925_v11 = vrot.slane %v1924_v56, 4 }
 0x46d   : > { %v1926_v57 = vadd.f32 %v1925_v11, %v1924_v56 }
 0x46f   : > { %v1927_v32 = vrot.slane %v1926_v57, 2 }
 0x471   : > { %v1928_v37 = vadd.f32 %v1927_v32, %v1926_v57 }
 0x473   : > { %v1929_v13 = vrot.slane %v1928_v37, 1 }
 0x475   : > { %v1930_v14 = vadd.f32 %v1929_v13, %v1928_v37 }
 0x477   : > { %v1932_v15 = vadd.f32 %v1931_v41, %v1930_v14 }
 0x479   : > { %v1935_v62 = vadd.f32 %v1934_v42, %v1932_v15 }
 0x47b   : > { %1937 = vst.msk [vmem:[%s930_s30] sm:$0x1] %vm1936_vm12, %v1935_v62  ;;  %2331 = vmatmul.mubr.msk.f32.vlgmr.msra.gmra.mrb[0].mxu1 %vm936_vm0, %v1935_v62  ;;  %s2333_s30 = sshll.u32 %s2696_s25, 4  ;;  %s2714_s25 = smov [#allocation11]  }
 0x47c   : > { %s3227_s23 = scalar_lea.hbm %s3346_s3, %s2333_s30  ;;  %s2628_s16 = sshll.u32 %s2714_s25, 4  ;;  %s2629_s16 = int_to_ptr.vmem [resolvable:$false] %s2628_s16 }
 0x47d   : > { %s2630_s20 = scalar_lea.vmem %s2629_s16, 32  ;;  %p2631_p8 = scmp.lt.s32.totalorder %s3229_s0, %s2629_s16 }
 0x47e   : > { %p2632_p10 = scmp.lt.s32.totalorder %s2630_s20, %s2624_s17 }
 0x480   : > { %p2633_p11 = por %p2632_p10, %p2631_p8 }
 0x482   : > { %p2634_p12 = pnand %p2633_p11, %p2627_p7 }
 0x54e   : > { %v2027_v19 = vpop.f32.mrb[0].mxu1 }
 0x54f   : > { %v2029_v21 = vpop.f32.mrb[1].mxu1  ;;  %v2028_v27 = vadd.f32 %v2027_v19, %v1951_v0 }
 0x550   : > { %v2030_v22 = vadd.f32 %v2029_v21, %v1955_v18 }
 0x552   : > { %v2332_v58 = vmul.f32 -1.442695, %v2030_v22 }
 0x554   : > { %2584 = vpow2.f32 %v2332_v58 }
 0x55e   : > { %v2585_v25 = vpop.eup %2584 }
 0x55f   : > { %v2035_v26 = vadd.f32 1.0, %v2585_v25 }
 0x561   : > { %2586 = vrcp.f32 %v2035_v26 }
 0x56b   : > { %v2587_v60 = vpop.eup %2586 }
 0x56c   : > { %v2038_v28 = vmul.f32 %v2587_v60, %v2028_v27 }
 0x56e   : > { %2039 = vst [vmem:[%s3006_s27] sm:$0x1] %v2038_v28 }
 0x56f   : > { %2637 = shalt.err (!%p2634_p12)
}
 0x570   : > { %s2638_s27 = scalar_lea.hbm %s3227_s23, 16  ;;  %s2642_s5 = scalar_lea.hbm %s3346_s3, 32 }
 0x571   : > { %p2639_p13 = scmp.ne.s32.totalorder %s3227_s23, %s2638_s27  ;;  %p2643_p2 = scmp.lt.u32.totalorder %s3227_s23, %s3346_s3 }
 0x572   : > { %p2644_p3 = scmp.lt.u32.totalorder %s2642_s5, %s2638_s27  ;;  %p2646_p6 = scmp.lt.u32.totalorder %s2638_s27, %s3227_s23 }
 0x573   : > { %p2640_p0 = pnand %p2639_p13, %p2878_p5 }
 0x574   : > { %p2645_p4 = por %p2644_p3, %p2643_p2 }
 0x575   : > { %p2641_p1 = pneg %p2640_p0 }
 0x576   : > { %p2647_p7 = por %p2646_p6, %p2645_p4 }
 0x578   : > { %p2648_p8 = pnand %p2647_p7, %p2641_p1 }
 0x57a   : > { %2651 = shalt.err (!%p2648_p8)
}
 0x57b   : > { %2451 = dma.vmem_to_hbm [thread:$0]  (%p2878_p5), %s3229_s0, 16, %s3227_s23, %s2048_s21  }
 0x57c PF: > { %s3348_s1 = sld [smem:[#allocation18_spill]]  ;;  %s3349_s26 = sld [smem:[#allocation15_spill]] }
 0x582   : > { %p2457_p10 = scmp.ge.s32.totalorder %s3348_s1, 2  ;;  %s2091_s2 = sand.u32 1, %s3349_s26  }
 0x583   : > { %s2092_s22 = scalar_lea.sflag [#allocation12], %s2091_s2 }
 0x584   : > { %p2454_p11 = pnand %p2457_p10, %p2885_p9 }
 0x586   : > { %2679 = dma.done.wait (!%p2454_p11), %s2092_s22, 16  }
 0x587   : > { %2681 = vsyncadd (!%p2454_p11), %s2092_s22, 4294967280  ;;  %s51_s16 = sadd.s32 1, %s3348_s1   ;;  %s3351_s6 = sld [smem:[#allocation16_spill]] }
 0x588   : > { %p48_p12 = scmp.ge.s32.totalorder %s51_s16, 4   ;;  %s3352_s4 = sld [smem:[#allocation22_spill]] }
 0x589   : > { %s3353_s25 = sld [smem:[#allocation17_spill]]  ;;  %s3354_s5 = sld [smem:[#allocation19_spill]] }
 0x58a   : > { %s3355_s15 = smov %s2688_s24  ;;  %50 = sbr.rel (!%p48_p12) target bundleno = 48 (0x30), region = 169 }
 0x58d   : > { %s3356_s24 = smov %s3351_s6 }
 0x591   :  { %2096 = vsyncpa [#allocation12], 1 }
 0x592   :  { %2098 = vsyncpa [#allocation12 + $0x1], 1 }

</bundles_post_ra>
